<compile_context>
chip_gen: v7x
topology: tpu7x:2x2x1
jax: 0.10.0
libtpu: 0.0.40
codegen_flags: <defaults>
</compile_context>

<pallas_src>
import jax
import jax.numpy as jnp
from jax import lax
from jax.experimental import pallas as pl
from jax.experimental.pallas import tpu as pltpu


# ---------------------------------------------------------------------------
# Pallas kernel: grid = (batch, row-tile of the L x L covariance output).
# ---------------------------------------------------------------------------
def _evi_conv2d_kernel(pT_ref, p_ref, sp_ref, w_ref, w2_ref, splus_ref,
                       mu_z_ref, sigma_z_ref, diag_ref):
    f32 = jnp.float32
    t = pl.program_id(1)
    C_out = sigma_z_ref.shape[1]
    TL = sigma_z_ref.shape[2]
    L = sigma_z_ref.shape[3]

    # -------- per-batch (row-tile-invariant) work, done once at t == 0 --------
    @pl.when(t == 0)
    def _():
        p_full = p_ref[0]                                     # (Kp, L)
        sp = sp_ref[0]                                        # (Kp, L)
        # mu_z = mean_conv(mu) == W_flat @ patches            -> (C_out, L)
        mu_z = jnp.dot(w_ref[...], p_full, preferred_element_type=f32)
        mu_z_ref[...] = mu_z[None].astype(mu_z_ref.dtype)
        # diagonal contribution of sigma_z:
        #   (W*W) @ sigma_patches + softplus(sigma_w) * trace -> (C_out, L)
        mw = jnp.dot(w2_ref[...], sp, preferred_element_type=f32)
        tr = jnp.sum(sp, axis=0, keepdims=True)               # (1, L)
        diag_ref[...] = mw + splus_ref[...] * tr               # (C_out, L)

    # -------- row slab of the Gram matrix: (TL, Kp) @ (Kp, L) -> (TL, L) --------
    xm = jnp.dot(pT_ref[0], p_ref[0], preferred_element_type=f32)

    # on-diagonal mask for this row slab (global row index == column index)
    row_g = t * TL + lax.broadcasted_iota(jnp.int32, (TL, L), 0)
    col = lax.broadcasted_iota(jnp.int32, (TL, L), 1)
    on_diag = row_g == col

    splus = splus_ref[...]                                     # (C_out, 1)
    diag_vals = diag_ref[...]                                  # (C_out, L)
    zero = jnp.zeros((), f32)

    # Stream one (TL, L) channel slab at a time directly into the output block.
    # On the diagonal, col == global row, so broadcasting diag_vals[c] as a row
    # vector and masking with on_diag places diag_vals[c, row] at (row, row).
    for c in range(C_out):
        base = splus[c:c + 1, 0:1] * xm                         # (TL, L)
        d_row = diag_vals[c:c + 1, :]                           # (1, L) -> rows
        slab = base + jnp.where(on_diag, d_row, zero)
        sigma_z_ref[0, c, :, :] = slab.astype(sigma_z_ref.dtype)


# ---------------------------------------------------------------------------
# Glue: im2col identical to torch.nn.Unfold(k) (stride=1, pad=0, dilation=1),
# index ordering c*k*k + kh*k + kw (channel-major), matching conv weight flatten.
# ---------------------------------------------------------------------------
def _im2col(x, k):
    B, C, H, W = x.shape
    Ho, Wo = H - k + 1, W - k + 1
    cols = []
    for kh in range(k):
        for kw in range(k):
            cols.append(x[:, :, kh:kh + Ho, kw:kw + Wo])       # (B, C, Ho, Wo)
    patches = jnp.stack(cols, axis=2)                          # (B, C, k*k, Ho, Wo)
    return patches.reshape(B, C * k * k, Ho * Wo)              # (B, K, L)


def _choose_row_tile(L, max_tile=64):
    """Largest divisor of L that is a multiple of 8 and <= max_tile (else L)."""
    best = None
    for tl in range(8, min(L, max_tile) + 1, 8):
        if L % tl == 0:
            best = tl
    return best if best is not None else L


def evi_conv2d_forward(mu, sigma, weight, sigma_w, kernel_size):
    B, C_in, H, W = mu.shape
    k = kernel_size
    Ho, Wo = H - k + 1, W - k + 1
    L = Ho * Wo
    K = C_in * k * k
    Kp = ((K + 127) // 128) * 128          # lane-aligned contraction dim
    C_out = weight.shape[0]
    TL = _choose_row_tile(L)
    T = L // TL

    # --- input prep (plain-JAX glue) ---
    patches = _im2col(mu, k).astype(jnp.float32)                       # (B, K, L)
    diag_sigma = jnp.diagonal(sigma, axis1=2, axis2=3)                 # (B, C_in, H*W)
    diag_sigma = diag_sigma.reshape(B, C_in, H, W)
    sig_patches = _im2col(diag_sigma, k).astype(jnp.float32)           # (B, K, L)

    pad = ((0, 0), (0, Kp - K), (0, 0))
    patches_p = jnp.pad(patches, pad)                                  # (B, Kp, L)
    sig_patches_p = jnp.pad(sig_patches, pad)                          # (B, Kp, L)
    patches_T = jnp.swapaxes(patches_p, 1, 2)                          # (B, L, Kp)

    w_flat = weight.reshape(C_out, K).astype(jnp.float32)
    w_flat = jnp.pad(w_flat, ((0, 0), (0, Kp - K)))                    # (C_out, Kp)
    w2_flat = w_flat * w_flat                                          # hoisted
    splus = jax.nn.softplus(sigma_w.astype(jnp.float32)).reshape(C_out, 1)

    cost = pl.CostEstimate(
        flops=int(B * (2 * L * Kp * L + 4 * C_out * Kp * L + 3 * C_out * L * L)),
        transcendentals=0,
        bytes_accessed=int(B * (3 * Kp * L + C_out * L * L + C_out * L) * 4),
    )

    mu_z_flat, sigma_z = pl.pallas_call(
        _evi_conv2d_kernel,
        out_shape=(jax.ShapeDtypeStruct((B, C_out, L), jnp.float32),
                   jax.ShapeDtypeStruct((B, C_out, L, L), jnp.float32)),
        grid_spec=pltpu.PrefetchScalarGridSpec(
            num_scalar_prefetch=0,
            grid=(B, T),
            in_specs=[
                pl.BlockSpec((1, TL, Kp), lambda b, t: (b, t, 0)),     # patches^T slab
                pl.BlockSpec((1, Kp, L), lambda b, t: (b, 0, 0)),      # patches (full)
                pl.BlockSpec((1, Kp, L), lambda b, t: (b, 0, 0)),      # sigma patches
                pl.BlockSpec((C_out, Kp), lambda b, t: (0, 0)),        # W
                pl.BlockSpec((C_out, Kp), lambda b, t: (0, 0)),        # W*W
                pl.BlockSpec((C_out, 1), lambda b, t: (0, 0)),         # softplus(sigma_w)
            ],
            out_specs=[
                pl.BlockSpec((1, C_out, L), lambda b, t: (b, 0, 0)),   # mu_z (resident over t)
                pl.BlockSpec((1, C_out, TL, L), lambda b, t: (b, 0, t, 0)),
            ],
            scratch_shapes=[pltpu.VMEM((C_out, L), jnp.float32)],      # diag values carry
        ),
        compiler_params=pltpu.CompilerParams(
            dimension_semantics=("parallel", "arbitrary")),
        cost_estimate=cost,
    )(patches_T, patches_p, sig_patches_p, w_flat, w2_flat, splus)

    mu_z = mu_z_flat.reshape(B, C_out, Ho, Wo)
    return mu_z, sigma_z


# ---------------------------------------------------------------------------
# Pure-JAX reference (mirrors the PyTorch forward, input_flag=False branch).
# ---------------------------------------------------------------------------
def evi_conv2d_reference(mu, sigma, weight, sigma_w, k):
    B, C_in, H, W = mu.shape
    C_out = weight.shape[0]
    Ho, Wo = H - k + 1, W - k + 1
    K = C_in * k * k

    patches = _im2col(mu, k)                                       # (B, K, L)
    diag_sigma = jnp.diagonal(sigma, axis1=2, axis2=3).reshape(B, C_in, H, W)
    sig_patches = _im2col(diag_sigma, k)                           # (B, K, L)
    w_flat = weight.reshape(C_out, K)

    mu_z = jnp.einsum('ok,bkl->bol', w_flat, patches).reshape(B, C_out, Ho, Wo)

    mw = jnp.einsum('ok,bkl->bol', w_flat * w_flat, sig_patches)   # (B, C_out, L)
    sigma_1 = jax.vmap(jax.vmap(jnp.diag))(mw)                     # (B, C_out, L, L)

    splus = jnp.log1p(jnp.exp(sigma_w))                            # (1, C_out)
    tr = jnp.sum(sig_patches, axis=1)                              # (B, L)
    trace = splus[:, :, None] * tr[:, None, :]                     # (B, C_out, L)
    trace_1 = jax.vmap(jax.vmap(jnp.diag))(trace)                  # (B, C_out, L, L)

    xm = jnp.einsum('bkl,bkm->blm', patches, patches)              # (B, L, L)
    sigma_3 = splus.reshape(1, C_out, 1, 1) * xm[:, None, :, :]

    return mu_z, sigma_1 + trace_1 + sigma_3


# NOTE: the input_flag=True branch is the subset (mu_z, sigma_3) of the above and can be
# served by the same kernel with sigma_patches zeroed; not exposed here.

if __name__ == "__main__":
    B, C_in, C_out, H, W, k = 2, 4, 4, 16, 16, 5
    key = jax.random.PRNGKey(0)
    k_mu, k_sig, k_w, k_sw = jax.random.split(key, 4)

    mu = jax.random.normal(k_mu, (B, C_in, H, W), dtype=jnp.float32)
    # sigma: full [B, C_in, H*W, H*W] covariance-like input (only diagonal used)
    sigma = jax.random.uniform(k_sig, (B, C_in, H * W, H * W),
                               dtype=jnp.float32, minval=0.0, maxval=1.0)

    # mean_conv.weight ~ N(mean_mu=0, mean_sigma=0.1)
    weight = 0.1 * jax.random.normal(k_w, (C_out, C_in, k, k), dtype=jnp.float32)
    # sigma_conv_weight ~ U(sigma_min=-12, sigma_max=-2.2), shape [1, C_out]
    sigma_w = jax.random.uniform(k_sw, (1, C_out), dtype=jnp.float32,
                                 minval=-12.0, maxval=-2.2)

    mu_z, sigma_z = evi_conv2d_forward(mu, sigma, weight, sigma_w, k)
    jax.block_until_ready((mu_z, sigma_z))

    mu_z_ref, sigma_z_ref = evi_conv2d_reference(mu, sigma, weight, sigma_w, k)
    Ho, Wo = H - k + 1, W - k + 1
    assert mu_z.shape == (B, C_out, Ho, Wo)
    assert sigma_z.shape == (B, C_out, Ho * Wo, Ho * Wo)
    assert jnp.allclose(mu_z, mu_z_ref, rtol=1e-3, atol=1e-3)
    assert jnp.allclose(sigma_z, sigma_z_ref, rtol=1e-3, atol=1e-2)

    print("KERNEL_OK")
</pallas_src>

<mosaic_0001>
module attributes {stable_mosaic.version = 11 : i64} {
  func.func @_evi_conv2d_kernel(%arg0: i32, %arg1: i32, %arg2: memref<1x48x128xf32, #tpu.memory_space<vmem>>, %arg3: memref<1x128x144xf32, #tpu.memory_space<vmem>>, %arg4: memref<1x128x144xf32, #tpu.memory_space<vmem>>, %arg5: memref<4x128xf32, #tpu.memory_space<vmem>>, %arg6: memref<4x128xf32, #tpu.memory_space<vmem>>, %arg7: memref<4x1xf32, #tpu.memory_space<vmem>>, %arg8: memref<1x4x144xf32, #tpu.memory_space<vmem>>, %arg9: memref<1x4x48x144xf32, #tpu.memory_space<vmem>>, %arg10: memref<4x144xf32, #tpu.memory_space<vmem>>) attributes {dimension_semantics = [#tpu.dimension_semantics<parallel>, #tpu.dimension_semantics<arbitrary>], iteration_bounds = array<i64: 2, 3>, scalar_prefetch = 0 : i64, scratch_operands = 1 : i64, tpu.core_type = #tpu.core_type<tc>, window_params = [{transform_indices = @transform_0, window_bounds = array<i64: 1, 48, 128>}, {transform_indices = @transform_1, window_bounds = array<i64: 1, 128, 144>}, {transform_indices = @transform_2, window_bounds = array<i64: 1, 128, 144>}, {pipeline_mode = #tpu.pipeline_mode<synchronous>, transform_indices = @transform_3, window_bounds = array<i64: 4, 128>}, {pipeline_mode = #tpu.pipeline_mode<synchronous>, transform_indices = @transform_4, window_bounds = array<i64: 4, 128>}, {pipeline_mode = #tpu.pipeline_mode<synchronous>, transform_indices = @transform_5, window_bounds = array<i64: 4, 1>}, {transform_indices = @transform_6, window_bounds = array<i64: 1, 4, 144>}, {transform_indices = @transform_7, window_bounds = array<i64: 1, 4, 48, 144>}]} {
    %c0_i32 = arith.constant 0 : i32
    %0 = arith.cmpi eq, %arg1, %c0_i32 : i32
    %1 = arith.extui %0 : i1 to i32
    %c0_i32_0 = arith.constant 0 : i32
    %2 = arith.cmpi ne, %1, %c0_i32_0 : i32
    scf.if %2 {
      %c0_27 = arith.constant 0 : index
      %c0_28 = arith.constant 0 : index
      %c0_29 = arith.constant 0 : index
      %64 = vector.load %arg3[%c0_27, %c0_28, %c0_29] : memref<1x128x144xf32, #tpu.memory_space<vmem>>, vector<1x128x144xf32>
      %65 = vector.shape_cast %64 : vector<1x128x144xf32> to vector<128x144xf32>
      %c0_30 = arith.constant 0 : index
      %c0_31 = arith.constant 0 : index
      %c0_32 = arith.constant 0 : index
      %66 = vector.load %arg4[%c0_30, %c0_31, %c0_32] : memref<1x128x144xf32, #tpu.memory_space<vmem>>, vector<1x128x144xf32>
      %67 = vector.shape_cast %66 : vector<1x128x144xf32> to vector<128x144xf32>
      %c0_33 = arith.constant 0 : index
      %c0_34 = arith.constant 0 : index
      %68 = vector.load %arg5[%c0_33, %c0_34] : memref<4x128xf32, #tpu.memory_space<vmem>>, vector<4x128xf32>
      %cst_35 = arith.constant dense<0.000000e+00> : vector<4x144xf32>
      %69 = tpu.matmul %68, %65, %cst_35 {dimension_numbers = #tpu.dot_dimension_numbers<[1], [0], [0], [1], [0, 0, 1, 1], [], []>} : vector<4x128xf32>, vector<128x144xf32>, vector<4x144xf32> -> vector<4x144xf32>
      %70 = vector.shape_cast %69 : vector<4x144xf32> to vector<1x4x144xf32>
      %c0_36 = arith.constant 0 : index
      %c0_37 = arith.constant 0 : index
      %c0_38 = arith.constant 0 : index
      %71 = vector.load %arg8[%c0_36, %c0_37, %c0_38] : memref<1x4x144xf32, #tpu.memory_space<vmem>>, vector<1x4x144xf32>
      tpu.vector_store %arg8[%c0_36, %c0_37, %c0_38], %70 {strides = array<i32>} : memref<1x4x144xf32, #tpu.memory_space<vmem>>, vector<1x4x144xf32>,
      %c0_39 = arith.constant 0 : index
      %c0_40 = arith.constant 0 : index
      %72 = vector.load %arg6[%c0_39, %c0_40] : memref<4x128xf32, #tpu.memory_space<vmem>>, vector<4x128xf32>
      %cst_41 = arith.constant dense<0.000000e+00> : vector<4x144xf32>
      %73 = tpu.matmul %72, %67, %cst_41 {dimension_numbers = #tpu.dot_dimension_numbers<[1], [0], [0], [1], [0, 0, 1, 1], [], []>} : vector<4x128xf32>, vector<128x144xf32>, vector<4x144xf32> -> vector<4x144xf32>
      %cst_42 = arith.constant dense<0.000000e+00> : vector<144xf32>
      %74 = vector.multi_reduction <add>, %67, %cst_42 [0] : vector<128x144xf32> to vector<144xf32>
      %75 = vector.shape_cast %74 : vector<144xf32> to vector<1x144xf32>
      %c0_43 = arith.constant 0 : index
      %c0_44 = arith.constant 0 : index
      %76 = vector.load %arg7[%c0_43, %c0_44] : memref<4x1xf32, #tpu.memory_space<vmem>>, vector<4x1xf32>
      %77 = vector.broadcast %76 : vector<4x1xf32> to vector<4x144xf32>
      %78 = vector.broadcast %75 : vector<1x144xf32> to vector<4x144xf32>
      %79 = arith.mulf %77, %78 : vector<4x144xf32>
      %80 = arith.addf %73, %79 : vector<4x144xf32>
      %c0_45 = arith.constant 0 : index
      %c0_46 = arith.constant 0 : index
      %81 = vector.load %arg10[%c0_45, %c0_46] : memref<4x144xf32, #tpu.memory_space<vmem>>, vector<4x144xf32>
      tpu.vector_store %arg10[%c0_45, %c0_46], %80 {strides = array<i32>} : memref<4x144xf32, #tpu.memory_space<vmem>>, vector<4x144xf32>,
    } else {
    }
    %c0 = arith.constant 0 : index
    %c0_1 = arith.constant 0 : index
    %c0_2 = arith.constant 0 : index
    %3 = vector.load %arg2[%c0, %c0_1, %c0_2] : memref<1x48x128xf32, #tpu.memory_space<vmem>>, vector<1x48x128xf32>
    %4 = vector.shape_cast %3 : vector<1x48x128xf32> to vector<48x128xf32>
    %c0_3 = arith.constant 0 : index
    %c0_4 = arith.constant 0 : index
    %c0_5 = arith.constant 0 : index
    %5 = vector.load %arg3[%c0_3, %c0_4, %c0_5] : memref<1x128x144xf32, #tpu.memory_space<vmem>>, vector<1x128x144xf32>
    %6 = vector.shape_cast %5 : vector<1x128x144xf32> to vector<128x144xf32>
    %cst = arith.constant dense<0.000000e+00> : vector<48x144xf32>
    %7 = tpu.matmul %4, %6, %cst {dimension_numbers = #tpu.dot_dimension_numbers<[1], [0], [0], [1], [0, 0, 1, 1], [], []>} : vector<48x128xf32>, vector<128x144xf32>, vector<48x144xf32> -> vector<48x144xf32>
    %c48_i32 = arith.constant 48 : i32
    %8 = arith.muli %arg1, %c48_i32 : i32
    %9 = tpu.iota {dimensions = array<i32: 0>} : vector<48x144xi32>
    %10 = vector.broadcast %8 : i32 to vector<48x144xi32>
    %11 = arith.addi %10, %9 : vector<48x144xi32>
    %12 = tpu.iota {dimensions = array<i32: 1>} : vector<48x144xi32>
    %13 = arith.cmpi eq, %11, %12 : vector<48x144xi32>
    %c0_6 = arith.constant 0 : index
    %c0_7 = arith.constant 0 : index
    %14 = vector.load %arg7[%c0_6, %c0_7] : memref<4x1xf32, #tpu.memory_space<vmem>>, vector<4x1xf32>
    %c0_8 = arith.constant 0 : index
    %c0_9 = arith.constant 0 : index
    %15 = vector.load %arg10[%c0_8, %c0_9] : memref<4x144xf32, #tpu.memory_space<vmem>>, vector<4x144xf32>
    %16 = vector.extract_strided_slice %14 {offsets = [0, 0], sizes = [1, 1], strides = [1, 1]} : vector<4x1xf32> to vector<1x1xf32>
    %17 = vector.broadcast %16 : vector<1x1xf32> to vector<48x144xf32>
    %18 = arith.mulf %17, %7 : vector<48x144xf32>
    %19 = vector.extract_strided_slice %15 {offsets = [0, 0], sizes = [1, 144], strides = [1, 1]} : vector<4x144xf32> to vector<1x144xf32>
    %cst_10 = arith.constant 0.000000e+00 : f32
    %20 = vector.shape_cast %19 : vector<1x144xf32> to vector<1x144xf32>
    %21 = vector.broadcast %20 : vector<1x144xf32> to vector<48x144xf32>
    %22 = vector.broadcast %cst_10 : f32 to vector<48x144xf32>
    %23 = arith.select %13, %21, %22 : vector<48x144xi1>, vector<48x144xf32>
    %24 = arith.addf %18, %23 : vector<48x144xf32>
    %c0_11 = arith.constant 0 : index
    %c0_12 = arith.constant 0 : index
    %c0_13 = arith.constant 0 : index
    %c0_14 = arith.constant 0 : index
    %25 = vector.load %arg9[%c0_11, %c0_12, %c0_13, %c0_14] : memref<1x4x48x144xf32, #tpu.memory_space<vmem>>, vector<1x1x48x144xf32>
    %26 = vector.shape_cast %25 : vector<1x1x48x144xf32> to vector<48x144xf32>
    %27 = vector.shape_cast %24 : vector<48x144xf32> to vector<1x1x48x144xf32>
    tpu.vector_store %arg9[%c0_11, %c0_12, %c0_13, %c0_14], %27 {strides = array<i32>} : memref<1x4x48x144xf32, #tpu.memory_space<vmem>>, vector<1x1x48x144xf32>,
    %28 = vector.extract_strided_slice %14 {offsets = [1, 0], sizes = [1, 1], strides = [1, 1]} : vector<4x1xf32> to vector<1x1xf32>
    %29 = vector.broadcast %28 : vector<1x1xf32> to vector<48x144xf32>
    %30 = arith.mulf %29, %7 : vector<48x144xf32>
    %31 = vector.extract_strided_slice %15 {offsets = [1, 0], sizes = [1, 144], strides = [1, 1]} : vector<4x144xf32> to vector<1x144xf32>
    %cst_15 = arith.constant 0.000000e+00 : f32
    %32 = vector.shape_cast %31 : vector<1x144xf32> to vector<1x144xf32>
    %33 = vector.broadcast %32 : vector<1x144xf32> to vector<48x144xf32>
    %34 = vector.broadcast %cst_15 : f32 to vector<48x144xf32>
    %35 = arith.select %13, %33, %34 : vector<48x144xi1>, vector<48x144xf32>
    %36 = arith.addf %30, %35 : vector<48x144xf32>
    %c0_16 = arith.constant 0 : index
    %c1 = arith.constant 1 : index
    %c0_17 = arith.constant 0 : index
    %c0_18 = arith.constant 0 : index
    %37 = vector.load %arg9[%c0_16, %c1, %c0_17, %c0_18] : memref<1x4x48x144xf32, #tpu.memory_space<vmem>>, vector<1x1x48x144xf32>
    %38 = vector.shape_cast %37 : vector<1x1x48x144xf32> to vector<48x144xf32>
    %39 = vector.shape_cast %36 : vector<48x144xf32> to vector<1x1x48x144xf32>
    tpu.vector_store %arg9[%c0_16, %c1, %c0_17, %c0_18], %39 {strides = array<i32>} : memref<1x4x48x144xf32, #tpu.memory_space<vmem>>, vector<1x1x48x144xf32>,
    %40 = vector.extract_strided_slice %14 {offsets = [2, 0], sizes = [1, 1], strides = [1, 1]} : vector<4x1xf32> to vector<1x1xf32>
    %41 = vector.broadcast %40 : vector<1x1xf32> to vector<48x144xf32>
    %42 = arith.mulf %41, %7 : vector<48x144xf32>
    %43 = vector.extract_strided_slice %15 {offsets = [2, 0], sizes = [1, 144], strides = [1, 1]} : vector<4x144xf32> to vector<1x144xf32>
    %cst_19 = arith.constant 0.000000e+00 : f32
    %44 = vector.shape_cast %43 : vector<1x144xf32> to vector<1x144xf32>
    %45 = vector.broadcast %44 : vector<1x144xf32> to vector<48x144xf32>
    %46 = vector.broadcast %cst_19 : f32 to vector<48x144xf32>
    %47 = arith.select %13, %45, %46 : vector<48x144xi1>, vector<48x144xf32>
    %48 = arith.addf %42, %47 : vector<48x144xf32>
    %c0_20 = arith.constant 0 : index
    %c2 = arith.constant 2 : index
    %c0_21 = arith.constant 0 : index
    %c0_22 = arith.constant 0 : index
    %49 = vector.load %arg9[%c0_20, %c2, %c0_21, %c0_22] : memref<1x4x48x144xf32, #tpu.memory_space<vmem>>, vector<1x1x48x144xf32>
    %50 = vector.shape_cast %49 : vector<1x1x48x144xf32> to vector<48x144xf32>
    %51 = vector.shape_cast %48 : vector<48x144xf32> to vector<1x1x48x144xf32>
    tpu.vector_store %arg9[%c0_20, %c2, %c0_21, %c0_22], %51 {strides = array<i32>} : memref<1x4x48x144xf32, #tpu.memory_space<vmem>>, vector<1x1x48x144xf32>,
    %52 = vector.extract_strided_slice %14 {offsets = [3, 0], sizes = [1, 1], strides = [1, 1]} : vector<4x1xf32> to vector<1x1xf32>
    %53 = vector.broadcast %52 : vector<1x1xf32> to vector<48x144xf32>
    %54 = arith.mulf %53, %7 : vector<48x144xf32>
    %55 = vector.extract_strided_slice %15 {offsets = [3, 0], sizes = [1, 144], strides = [1, 1]} : vector<4x144xf32> to vector<1x144xf32>
    %cst_23 = arith.constant 0.000000e+00 : f32
    %56 = vector.shape_cast %55 : vector<1x144xf32> to vector<1x144xf32>
    %57 = vector.broadcast %56 : vector<1x144xf32> to vector<48x144xf32>
    %58 = vector.broadcast %cst_23 : f32 to vector<48x144xf32>
    %59 = arith.select %13, %57, %58 : vector<48x144xi1>, vector<48x144xf32>
    %60 = arith.addf %54, %59 : vector<48x144xf32>
    %c0_24 = arith.constant 0 : index
    %c3 = arith.constant 3 : index
    %c0_25 = arith.constant 0 : index
    %c0_26 = arith.constant 0 : index
    %61 = vector.load %arg9[%c0_24, %c3, %c0_25, %c0_26] : memref<1x4x48x144xf32, #tpu.memory_space<vmem>>, vector<1x1x48x144xf32>
    %62 = vector.shape_cast %61 : vector<1x1x48x144xf32> to vector<48x144xf32>
    %63 = vector.shape_cast %60 : vector<48x144xf32> to vector<1x1x48x144xf32>
    tpu.vector_store %arg9[%c0_24, %c3, %c0_25, %c0_26], %63 {strides = array<i32>} : memref<1x4x48x144xf32, #tpu.memory_space<vmem>>, vector<1x1x48x144xf32>,
    return
  }
  func.func @transform_0(%arg0: i32, %arg1: i32) -> (i32, i32, i32) {
    %c0_i32 = arith.constant 0 : i32
    %c0_i32_0 = arith.constant 0 : i32
    return %arg0, %arg1, %c0_i32 : i32, i32, i32
  }
  func.func @transform_1(%arg0: i32, %arg1: i32) -> (i32, i32, i32) {
    %c0_i32 = arith.constant 0 : i32
    %c0_i32_0 = arith.constant 0 : i32
    %c0_i32_1 = arith.constant 0 : i32
    return %arg0, %c0_i32, %c0_i32_0 : i32, i32, i32
  }
  func.func @transform_2(%arg0: i32, %arg1: i32) -> (i32, i32, i32) {
    %c0_i32 = arith.constant 0 : i32
    %c0_i32_0 = arith.constant 0 : i32
    %c0_i32_1 = arith.constant 0 : i32
    return %arg0, %c0_i32, %c0_i32_0 : i32, i32, i32
  }
  func.func @transform_3(%arg0: i32, %arg1: i32) -> (i32, i32) {
    %c0_i32 = arith.constant 0 : i32
    %c0_i32_0 = arith.constant 0 : i32
    %c0_i32_1 = arith.constant 0 : i32
    return %c0_i32, %c0_i32_0 : i32, i32
  }
  func.func @transform_4(%arg0: i32, %arg1: i32) -> (i32, i32) {
    %c0_i32 = arith.constant 0 : i32
    %c0_i32_0 = arith.constant 0 : i32
    %c0_i32_1 = arith.constant 0 : i32
    return %c0_i32, %c0_i32_0 : i32, i32
  }
  func.func @transform_5(%arg0: i32, %arg1: i32) -> (i32, i32) {
    %c0_i32 = arith.constant 0 : i32
    %c0_i32_0 = arith.constant 0 : i32
    %c0_i32_1 = arith.constant 0 : i32
    return %c0_i32, %c0_i32_0 : i32, i32
  }
  func.func @transform_6(%arg0: i32, %arg1: i32) -> (i32, i32, i32) {
    %c0_i32 = arith.constant 0 : i32
    %c0_i32_0 = arith.constant 0 : i32
    %c0_i32_1 = arith.constant 0 : i32
    return %arg0, %c0_i32, %c0_i32_0 : i32, i32, i32
  }
  func.func @transform_7(%arg0: i32, %arg1: i32) -> (i32, i32, i32, i32) {
    %c0_i32 = arith.constant 0 : i32
    %c0_i32_0 = arith.constant 0 : i32
    %c0_i32_1 = arith.constant 0 : i32
    return %arg0, %c0_i32, %arg1, %c0_i32_0 : i32, i32, i32, i32
  }
}

</mosaic_0001>

<bundles_post_ra>
// kernel: tpu_custom_call.1
= control target key start
LH: loop header
LB: loop body
LE: loop exit
PB: predicated region body
PF: predicated region fallthrough
CT: control target
= control target key end

     0   :  { %s2839_s0 = inlined_call_operand.hbm [shape: f32[2,144,128], index: 0, kind: input, shape index: {}]   ;;  %s2840_s1 = inlined_call_operand.vmem [shape: f32[2,128,144], index: 1, kind: input, shape index: {}]   ;;  %s2841_s2 = inlined_call_operand.vmem [shape: f32[2,128,144], index: 2, kind: input, shape index: {}]   ;;  %s2842_s3 = inlined_call_operand.hbm [shape: f32[4,128], index: 3, kind: input, shape index: {}]   ;;  %s2843_s4 = inlined_call_operand.hbm [shape: f32[4,128], index: 4, kind: input, shape index: {}]   ;;  %s2844_s5 = inlined_call_operand.vmem [shape: f32[4,1], index: 5, kind: input, shape index: {}]   ;;  %s2845_s6 = inlined_call_operand.hbm [shape: f32[2,4,144], index: 6, kind: output, shape index: {0}]   ;;  %s2846_s7 = inlined_call_operand.hbm [shape: f32[2,4,144,144], index: 7, kind: output, shape index: {1}]  }
   0x1   :  { %2866 = sst [smem:[#allocation34_spill]] %s2842_s3 }
   0x2   :  { %2867 = sst [smem:[#allocation35_spill]] %s2843_s4 }
   0x3   :  { %2868 = sst [smem:[#allocation36_spill]] %s2845_s6 }
   0x4   :  { %2869 = sst [smem:[#allocation37_spill]] %s2846_s7 }
   0x5   :  { %13 = vsyncpa [#allocation4], 0 }
   0x6   :  { %15 = vsyncpa [#allocation4 + $0x1], 0 }
   0x7   :  { %16 = vsyncpa [#allocation7], 0 }
   0x8   :  { %17 = vsyncpa [#allocation5], 0 }
   0x9   :  { %19 = vsyncpa [#allocation5 + $0x1], 0 }
   0xa   :  { %20 = vsyncpa [#allocation11], 0 }
   0xb   :  { %22 = vsyncpa [#allocation11 + $0x1], 0  ;;  %s1980_s24 = smov 0   ;;  %s1982_s25 = smov 0  }
   0xc   :  { %s1984_s26 = smov 0   ;;  %s1986_s27 = smov 0  }
   0xd   :  { %s1988_s28 = smov 0   ;;  %s1990_s29 = smov 0  }
   0xe   :  { %s1992_s30 = smov 0   ;;  %s1994_s8 = smov 0  }
   0xf   :  { %s1996_s9 = smov 0   ;;  %s1998_s10 = smov 0  }
  0x10   :  { %s2000_s11 = smov 0  }
  0x11 LB: > { %2870 = sst [smem:[#allocation18_spill]] %s1882_s24  ;;  %s1371_s12 = sadd.s32 4294967295, %s1922_s11   ;;  %s1922_s11 = sphi %s2000_s11, %s28_s11   ;;  %s1918_s10 = sphi %s1998_s10, %s2934_s10   ;;  %s1914_s9 = sphi %s1996_s9, %s2925_s9   ;;  %s1910_s8 = sphi %s1994_s8, %s2933_s8   ;;  %s1906_s30 = sphi %s1992_s30, %s2924_s30   ;;  %s1902_s29 = sphi %s1990_s29, %s2932_s29   ;;  %s1898_s28 = sphi %s1988_s28, %s2931_s28   ;;  %s1894_s27 = sphi %s1986_s27, %s2930_s27   ;;  %s1890_s26 = sphi %s1984_s26, %s2929_s26   ;;  %s1886_s25 = sphi %s1982_s25, %s2928_s25   ;;  %s1882_s24 = sphi %s1980_s24, %s2927_s24  }
  0x12   : > { %2871 = sst [smem:[#allocation19_spill]] %s1894_s27  ;;  %s1372_s13 = sadd.s32 4294967294, %s1922_s11  }
  0x13   : > { %2872 = sst [smem:[#allocation20_spill]] %s1914_s9  ;;  %p56_p0 = scmp.ne.s32.totalorder %s1902_s29, %s1898_s28 }
  0x14   : > { %2873 = sst [smem:[#allocation21_spill]] %s1922_s11  ;;  %p57_p1 = scmp.eq.s32.totalorder %s1922_s11, 0 }
  0x15   : > { %p62_p2 = scmp.ne.s32.totalorder %s1898_s28, %s1894_s27  ;;  %p2043_p3 = scmp.eq.s32.totalorder %s1371_s12, 0 }
  0x16   : > { %p2048_p4 = por %p57_p1, %p56_p0  ;;  %p200_p5 = scmp.ne.s32.totalorder %s1890_s26, %s1886_s25 }
  0x17   : > { %s2874_s15 = scalar_select %p2043_p3, 1, 0 }
  0x18   : > { %s2875_s17 = scalar_select %p2048_p4, 1, 0 }
  0x19   : > { %p2056_p6 = por %p2043_p3, %p62_p2  ;;  %p201_p7 = scmp.eq.s32.totalorder %s1371_s12, 5 }
  0x1a   : > { %p206_p8 = scmp.ne.s32.totalorder %s1886_s25, %s1882_s24  ;;  %p207_p9 = scmp.eq.s32.totalorder %s1372_s13, 5 }
  0x1b   : > { %s2876_s18 = scalar_select %p2056_p6, 1, 0 }
  0x1c   : > { %p2062_p10 = por %p201_p7, %p200_p5  ;;  %p2066_p11 = por %p201_p7, %p56_p0 }
  0x1d   : > { %p2070_p12 = por %p207_p9, %p206_p8  ;;  %p2074_p13 = por %p207_p9, %p62_p2 }
  0x1e   : > { %s2877_s19 = scalar_select %p2062_p10, 1, 0 }
  0x1f   : > { %s2878_s20 = scalar_select %p2066_p11, 1, 0 }
  0x20   : > { %s2880_s21 = scalar_select %p2070_p12, 1, 0 }
  0x21   : > { %2879 = sst [smem:[#allocation22_spill]] %s2878_s20  ;;  %p1373_p1 = scmp.ge.s32.totalorder %s1922_s11, 1 }
  0x22   : > { %2881 = sst [smem:[#allocation23_spill]] %s2880_s21  ;;  %p242_p6 = scmp.lt.s32.totalorder %s1922_s11, 7 }
  0x23   : > { %s2882_s22 = scalar_select %p2074_p13, 1, 0 }
  0x24   : > { %p2080_p4 = pnand %p1373_p1, %p242_p6  ;;  %s1924_s12 = smov [#allocation6]  }
  0x25   : > { %2883 = sst [smem:[#allocation24_spill]] %s2882_s22  ;;  %s255_s13 = sshll.u32 %s1924_s12, 4  ;;  %s256_s13 = int_to_ptr.vmem [resolvable:$true] %s255_s13 }
  0x26   : > { %s2884_s23 = scalar_select %p2080_p4, 1, 0 }
  0x27   : > { %p1579_p0 = pneg %p2080_p4  ;;  %p1599_p5 = scmp.lt.s32.totalorder %s1922_s11, 6 }
  0x28   : > { %p2886_p2 = scmp.ne.s32.totalorder %s2875_s17, 0  ;;  %s1925_s22 = smov [#allocation8]  }
  0x29   : > { %p2089_p7 = pnand %p1579_p0, %p2043_p3  ;;  %s266_s27 = sshll.u32 %s1925_s22, 4  ;;  %s267_s27 = int_to_ptr.vmem [resolvable:$true] %s266_s27 }
  0x2a   : > { %p2095_p8 = pnand %p1599_p5, %p2886_p2  ;;  %s2888_s3 = sld [smem:[#allocation34_spill]] }
  0x2b   : > { %p1708_p9 = pneg %p2089_p7 }
  0x2c   : > { %s2887_s16 = scalar_select %p2095_p8, 1, 0 }
  0x30   : > { %s1706_s24 = scalar_lea.hbm %s2888_s3, 64 }
  0x31   : > { %p1707_p6 = scmp.ne.s32.totalorder %s2888_s3, %s1706_s24  ;;  %p1713_p5 = scmp.lt.u32.totalorder %s1706_s24, %s2888_s3 }
  0x33   : > { %p1709_p1 = pnand %p1708_p9, %p1707_p6 }
  0x35   : > { %p1710_p0 = pneg %p1709_p1 }
  0x37   : > { %p1715_p2 = pnand %p1713_p5, %p1710_p0 }
  0x39   : > { %1718 = shalt.err (!%p1715_p2)
}
  0x3a   : > { %s1719_s22 = scalar_lea.vmem %s256_s13, 64  ;;  %p1727_p10 = scmp.lt.s32.totalorder %s256_s13, %s256_s13 }
  0x3b   : > { %p1720_p13 = scmp.ne.s32.totalorder %s256_s13, %s1719_s22  ;;  %p1728_p3 = scmp.lt.s32.totalorder %s1719_s22, %s1719_s22 }
  0x3d   : > { %p1722_p12 = pnand %p1720_p13, %p1708_p9  ;;  %p1729_p4 = por %p1728_p3, %p1727_p10 }
  0x3f   : > { %p1723_p11 = pneg %p1722_p12 }
  0x41   : > { %p1730_p8 = pnand %p1729_p4, %p1723_p11 }
  0x43   : > { %1733 = shalt.err (!%p1730_p8)
}
  0x44   : > { %1582 = dma.hbm_to_vmem [thread:$0]  (!%p2089_p7), %s2888_s3, 64, %s256_s13, [#allocation7]  }
  0x45   : > { %s2889_s4 = sld [smem:[#allocation35_spill]] }
  0x4b   : > { %s1734_s21 = scalar_lea.hbm %s2889_s4, 64 }
  0x4c   : > { %p1735_p12 = scmp.ne.s32.totalorder %s2889_s4, %s1734_s21  ;;  %p1741_p10 = scmp.lt.u32.totalorder %s1734_s21, %s2889_s4 }
  0x4e   : > { %p1737_p3 = pnand %p1735_p12, %p1708_p9 }
  0x50   : > { %p1738_p4 = pneg %p1737_p3 }
  0x52   : > { %p1743_p11 = pnand %p1741_p10, %p1738_p4 }
  0x54   : > { %1746 = shalt.err (!%p1743_p11)
}
  0x55   : > { %s1747_s13 = scalar_lea.vmem %s267_s27, 64  ;;  %p1755_p1 = scmp.lt.s32.totalorder %s267_s27, %s267_s27 }
  0x56   : > { %p1748_p13 = scmp.ne.s32.totalorder %s267_s27, %s1747_s13  ;;  %p1756_p0 = scmp.lt.s32.totalorder %s1747_s13, %s1747_s13 }
  0x58   : > { %p1750_p8 = pnand %p1748_p13, %p1708_p9  ;;  %p1757_p5 = por %p1756_p0, %p1755_p1 }
  0x5a   : > { %p1751_p6 = pneg %p1750_p8 }
  0x5c   : > { %p1758_p2 = pnand %p1757_p5, %p1751_p6 }
  0x5e   : > { %1761 = shalt.err (!%p1758_p2)
}
  0x5f   : > { %1585 = dma.hbm_to_vmem [thread:$0]  (!%p2089_p7), %s2889_s4, 64, %s267_s27, [#allocation7]  }
  0x60   : > { %s40_s6 = sadd.s32 1, %s1918_s10  ;;  %s37_s24 = sadd.s32 1, %s1914_s9 }
  0x61   : > { %s280_s20 = sand.u32 1, %s1902_s29   ;;  %p38_p9 = scmp.ge.s32.totalorder %s37_s24, 3 }
  0x62   : > { %s1546_s21 = smul.u32 48, %s280_s20  ;;  %p2894_p10 = scmp.ne.s32.totalorder %s2887_s16, 0 }
  0x63   : > { %s2936_s24 = smov (%p38_p9, %s37_s24), 0  ;;  %s2938_s6 = smov (!%p38_p9, %s40_s6), %s1918_s10 }
  0x64   : > { %2890 = sst [smem:[#allocation25_spill]] %s2936_s24  ;;  %s45_s14 = ssub.s32 %s1914_s9, %s2936_s24 }
  0x65   : > { %p42_p12 = scmp.ge.s32.totalorder %s2938_s6, 2  ;;  %s285_s12 = smul.u32 6, %s1914_s9 }
  0x66   : > { %s1547_s17 = smul.u32 18, %s1918_s10  ;;  %s284_s22 = scalar_lea.vmem [#allocation3], %s1546_s21 }
  0x67   : > { %s293_s27 = sshll.u32 %s284_s22, 4  ;;  %s2940_s6 = smov (%p42_p12, %s2938_s6), 0  ;;  %s2153_s27 = int_to_ptr.vmem [resolvable:$true] %s293_s27 }
  0x68   : > { %2891 = sst [smem:[#allocation26_spill]] %s2940_s6  ;;  %s290_s13 = sadd.s32 %s1547_s17, %s285_s12 }
  0x69   : > { %s44_s7 = ssub.s32 %s1918_s10, %s2940_s6  ;;  %s1377_s11 = sshll.u32 %s290_s13, 7 }
  0x6a   : > { %s46_s3 = sor.u32 %s45_s14, %s44_s7  ;;  %p188_p7 = scmp.eq.s32.totalorder %s44_s7, 0 }
  0x6b   : > { %p47_p3 = scmp.eq.s32.totalorder %s46_s3, 0  ;;  %s2160_s9 = scalar_lea.hbm %s2839_s0, %s1377_s11 }
  0x6c   : > { %s2892_s21 = sadd.s32 1, %s1890_s26  ;;  %s2893_s12 = sadd.s32 1, %s1902_s29 }
  0x6d   : > { %s2165_s22 = scalar_select %p188_p7, %s1890_s26, %s2892_s21  }
  0x6e   : > { %s2170_s17 = scalar_select %p47_p3, %s1902_s29, %s2893_s12  }
  0x6f   : > { %s2172_s6 = scalar_lea.sflag [#allocation4], %s280_s20  ;;  %s1762_s14 = scalar_lea.hbm %s2160_s9, 768 }
  0x70   : > { %p1763_p4 = scmp.ne.s32.totalorder %s2160_s9, %s1762_s14  ;;  %p1764_p11 = pneg %p2894_p10 }
  0x71   : > { %s1767_s24 = scalar_lea.hbm %s2839_s0, 4608  ;;  %p1768_p6 = scmp.lt.u32.totalorder %s2160_s9, %s2839_s0 }
  0x72   : > { %p1765_p13 = pnand %p1764_p11, %p1763_p4  ;;  %p1769_p1 = scmp.lt.u32.totalorder %s1767_s24, %s1762_s14 }
  0x73   : > { %p1771_p5 = scmp.lt.u32.totalorder %s1762_s14, %s2160_s9 }
  0x74   : > { %p1766_p8 = pneg %p1765_p13  ;;  %p1770_p0 = por %p1769_p1, %p1768_p6 }
  0x76   : > { %p1772_p2 = por %p1771_p5, %p1770_p0 }
  0x78   : > { %p1773_p9 = pnand %p1772_p2, %p1766_p8 }
  0x7a   : > { %1776 = shalt.err (!%p1773_p9)
}
  0x7b   : > { %s1777_s20 = scalar_lea.vmem %s2153_s27, 768  ;;  %s1926_s11 = smov [#allocation3]  }
  0x7c   : > { %p1778_p12 = scmp.ne.s32.totalorder %s2153_s27, %s1777_s20  ;;  %s1782_s21 = sshll.u32 %s1926_s11, 4  ;;  %s1783_s21 = int_to_ptr.vmem [resolvable:$false] %s1782_s21 }
  0x7d   : > { %s1784_s12 = scalar_lea.vmem %s1783_s21, 1536  ;;  %p1785_p4 = scmp.lt.s32.totalorder %s2153_s27, %s1783_s21 }
  0x7e   : > { %p1780_p7 = pnand %p1778_p12, %p1764_p11  ;;  %p1786_p13 = scmp.lt.s32.totalorder %s1784_s12, %s1777_s20 }
  0x80   : > { %p1781_p3 = pneg %p1780_p7  ;;  %p1787_p6 = por %p1786_p13, %p1785_p4 }
  0x82   : > { %p1788_p1 = pnand %p1787_p6, %p1781_p3 }
  0x84   : > { %1791 = shalt.err (!%p1788_p1)
}
  0x85   : > { %s1927_s14 = smov 128   ;;  %s1928_s3 = smov 8  }
  0x86   : > { %1589 = dma.hbm_to_vmem [thread:$0]  (!%p2894_p10), %s2160_s9, 768, %s2153_s27, %s2172_s6, %s1927_s14, %s1927_s14, %s1928_s3  }
  0x87   : > { %p2895_p11 = scmp.ne.s32.totalorder %s2884_s23, 0 }
  0x89   : > { %321 = sbr.rel (%p2895_p11) target bundleno = 706 (0x2c2), region = 44 }
  0x90   : > { %s2203_s4 = sand.u32 1, %s1898_s28   ;;  %p2896_p8 = scmp.ne.s32.totalorder %s2876_s18, 0 }
  0x91   : > { %s1548_s24 = smul.u32 48, %s2203_s4  ;;  %s324_s13 = scalar_lea.sflag [#allocation4], %s2203_s4 }
  0x93   : > { %s2207_s7 = scalar_lea.vmem [#allocation3], %s1548_s24 }
  0x94   : > { %1865 = dma.done.wait (%p2896_p8), %s324_s13, 768  }
  0x95   : > { %1867 = vsyncadd (%p2896_p8), %s324_s13, 4294966528  ;;  %p2897_p10 = scmp.ne.s32.totalorder %s2874_s15, 0 }
  0x97   : > { %1869 = dma.done.wait (%p2897_p10), [#allocation7], 128  }
  0x98   : > { %1871 = vsyncadd (%p2897_p10), [#allocation7], 4294967168  ;;  %s371_s9 = sand.u32 1, %s1886_s25   ;;  %s1549_s16 = smul.u32 384, %s2203_s4 }
  0x99   : > { %s2221_s23 = sshll.u32 %s371_s9, 3  ;;  %p382_p0 = scmp.lt.s32.totalorder %s1910_s8, 1 }
  0x9a   : > { %s373_s14 = scalar_lea.vmem [#allocation9], %s2221_s23  ;;  %s2236_s3 = scalar_lea.vmem [#allocation10], %s1549_s16 }
  0x9b   : > { %s383_s18 = scalar_select %p382_p0, %s1910_s8, 1 }
  0x9c   : > { %p1386_p5 = scmp.ne.s32.totalorder %s1906_s30, 0 }
  0x9d   : > { %s1430_s6 = sshll.u32 %s383_s18, 8  ;;  %vm563_vm0 = vcmask (!%p1386_p5), 130048   ;;  %v1929_v10 = vmov (!%p1386_p5), 0.0   ;;  %v1930_v16 = vmov (!%p1386_p5), 0   ;;  %vm537_vm1 = vcmask (!%p1386_p5), 1043456  }
  0x9e   : > { %s2228_s11 = scalar_lea.vmem %s2840_s1, %s1430_s6  ;;  %s2233_s12 = scalar_lea.vmem %s2841_s2, %s1430_s6  ;;  %673 = vmatprep.mubr.f32.mxu1 (!%p1386_p5), %v1929_v10  ;;  %526 = vmatprep.mubr.f32.mxu0 (!%p1386_p5), %v1929_v10  ;;  %vm538_vm2 = vcmask (!%p1386_p5), 130052  }
  0x9f   : > { %396 = sbr.rel (%p1386_p5) target bundleno = 412 (0x19c), region = 60  ;;  %v430_v0 = vld [vmem:[%s2233_s12 + $0x8] sm:$0xff] (!%p1386_p5)  ;;  %v432_v1 = vld [vmem:[%s2233_s12 + $0x18] sm:$0xff] (!%p1386_p5)  ;;  %v429_v9 = vld [vmem:[%s2233_s12] sm:$0xff] (!%p1386_p5)  ;;  %1705 = vset.pattern.permute.xlu0 (!%p1386_p5), %v1930_v16 }
  0xa0   : > { %v434_v2 = vld [vmem:[%s2233_s12 + $0x28] sm:$0xff] (!%p1386_p5)  ;;  %v564_v3 = vsel (!%p1386_p5), %vm563_vm0, %v430_v0, 0.0  ;;  %v565_v4 = vsel (!%p1386_p5), %vm563_vm0, %v432_v1, 0.0  ;;  %v1466_v6 = vpack.c.bf16 (!%p1386_p5), %v432_v1, %v430_v0  ;;  %v400_v8 = vld [vmem:[%s2228_s11 + $0x18] sm:$0xff] (!%p1386_p5)  ;;  %v431_v13 = vld [vmem:[%s2233_s12 + $0x10] sm:$0xff] (!%p1386_p5) }
  0xa1   : > { %v567_v5 = vsel (!%p1386_p5), %vm563_vm0, %v434_v2, 0.0  ;;  %v398_v7 = vld [vmem:[%s2228_s11 + $0x8] sm:$0xff] (!%p1386_p5)  ;;  %v566_v11 = vadd.f32 (!%p1386_p5), %v565_v4, %v564_v3  ;;  %v397_v14 = vld [vmem:[%s2228_s11] sm:$0xff] (!%p1386_p5)  ;;  %v399_v15 = vld [vmem:[%s2228_s11 + $0x10] sm:$0xff] (!%p1386_p5)  ;;  %v542_v17 = vadd.f32 (!%p1386_p5), %v431_v13, %v429_v9  ;;  %v1468_v18 = vpack.c.bf16 (!%p1386_p5), %v431_v13, %v429_v9 }
  0xa2   : > { %v1434_v12 = vpack.c.bf16 (!%p1386_p5), %v400_v8, %v398_v7  ;;  %1467 = vmatprep.subr.bf16.mxu1 (!%p1386_p5), %v1466_v6  ;;  %v1436_v19 = vpack.c.bf16 (!%p1386_p5), %v399_v15, %v397_v14  ;;  %v436_v20 = vld [vmem:[%s2233_s12 + $0x38] sm:$0xff] (!%p1386_p5)  ;;  %v402_v21 = vld [vmem:[%s2228_s11 + $0x28] sm:$0xff] (!%p1386_p5)  ;;  %v433_v27 = vld [vmem:[%s2233_s12 + $0x20] sm:$0xff] (!%p1386_p5) }
  0xa3   : > { %v404_v22 = vld [vmem:[%s2228_s11 + $0x38] sm:$0xff] (!%p1386_p5)  ;;  %v568_v23 = vadd.f32 (!%p1386_p5), %v567_v5, %v566_v11  ;;  %v569_v24 = vsel (!%p1386_p5), %vm563_vm0, %v436_v20, 0.0  ;;  %v1470_v25 = vpack.c.bf16 (!%p1386_p5), %v436_v20, %v434_v2  ;;  %v435_v28 = vld [vmem:[%s2233_s12 + $0x30] sm:$0xff] (!%p1386_p5)  ;;  %v401_v29 = vld [vmem:[%s2228_s11 + $0x20] sm:$0xff] (!%p1386_p5)  ;;  %1469 = vmatpush1.bf16.msra.mxu1 (!%p1386_p5), %v1468_v18  ;;  %v543_v30 = vadd.f32 (!%p1386_p5), %v542_v17, %v433_v27 }
  0xa4   : > { %1435 = vmatprep.subr.bf16.mxu0 (!%p1386_p5), %v1434_v12  ;;  %v1438_v26 = vpack.c.bf16 (!%p1386_p5), %v404_v22, %v402_v21  ;;  %v1472_v31 = vpack.c.bf16 (!%p1386_p5), %v435_v28, %v433_v27  ;;  %v403_v32 = vld [vmem:[%s2228_s11 + $0x30] sm:$0xff] (!%p1386_p5)  ;;  %v438_v33 = vld [vmem:[%s2233_s12 + $0x48] sm:$0xff] (!%p1386_p5)  ;;  %v440_v34 = vld [vmem:[%s2233_s12 + $0x58] sm:$0xff] (!%p1386_p5) }
  0xa5   : > { %1437 = vmatpush1.bf16.msra.mxu0 (!%p1386_p5), %v1436_v19  ;;  %v570_v35 = vadd.f32 (!%p1386_p5), %v569_v24, %v568_v23  ;;  %1471 = vmatprep.subr.bf16.mxu1 (!%p1386_p5), %v1470_v25  ;;  %v1440_v36 = vpack.c.bf16 (!%p1386_p5), %v403_v32, %v401_v29  ;;  %v571_v37 = vsel (!%p1386_p5), %vm563_vm0, %v438_v33, 0.0  ;;  %v406_v38 = vld [vmem:[%s2228_s11 + $0x48] sm:$0xff] (!%p1386_p5)  ;;  %v408_v39 = vld [vmem:[%s2228_s11 + $0x58] sm:$0xff] (!%p1386_p5)  ;;  %v437_v40 = vld [vmem:[%s2233_s12 + $0x40] sm:$0xff] (!%p1386_p5)  ;;  %v544_v41 = vadd.f32 (!%p1386_p5), %v543_v30, %v435_v28 }
  0xa6   : > { %1439 = vmatprep.subr.bf16.mxu0 %v1438_v26  ;;  %v573_v42 = vsel %vm563_vm0, %v440_v34, 0.0  ;;  %v1474_v43 = vpack.c.bf16 %v440_v34, %v438_v33  ;;  %v1442_v44 = vpack.c.bf16 %v408_v39, %v406_v38  ;;  %v439_v45 = vld [vmem:[%s2233_s12 + $0x50] sm:$0xff]  ;;  %v405_v46 = vld [vmem:[%s2228_s11 + $0x40] sm:$0xff]  ;;  %v442_v49 = vld [vmem:[%s2233_s12 + $0x68] sm:$0xff] }
  0xa7   : > { %v407_v47 = vld [vmem:[%s2228_s11 + $0x50] sm:$0xff]  ;;  %v572_v48 = vadd.f32 %v571_v37, %v570_v35  ;;  %v444_v50 = vld [vmem:[%s2233_s12 + $0x78] sm:$0xff]  ;;  %v410_v51 = vld [vmem:[%s2228_s11 + $0x68] sm:$0xff]  ;;  %1473 = vmatpush1.bf16.msra.mxu1 %v1472_v31  ;;  %v545_v52 = vadd.f32 %v544_v41, %v437_v40  ;;  %v1476_v53 = vpack.c.bf16 %v439_v45, %v437_v40  ;;  %v575_v55 = vsel %vm563_vm0, %v442_v49, 0.0 }
  0xa8   : > { %v1444_v54 = vpack.c.bf16 %v407_v47, %v405_v46  ;;  %v412_v56 = vld [vmem:[%s2228_s11 + $0x78] sm:$0xff]  ;;  %v441_v57 = vld [vmem:[%s2233_s12 + $0x60] sm:$0xff]  ;;  %v443_v58 = vld [vmem:[%s2233_s12 + $0x70] sm:$0xff]  ;;  %1475 = vmatprep.subr.bf16.mxu1 %v1474_v43  ;;  %v1478_v60 = vpack.c.bf16 %v444_v50, %v442_v49  ;;  %v577_v2 = vsel %vm563_vm0, %v444_v50, 0.0 }
  0xa9   : > { %1441 = vmatpush1.bf16.msra.mxu0 %v1440_v36  ;;  %v574_v59 = vadd.f32 %v573_v42, %v572_v48  ;;  %v1446_v61 = vpack.c.bf16 %v412_v56, %v410_v51  ;;  %v409_v62 = vld [vmem:[%s2228_s11 + $0x60] sm:$0xff]  ;;  %v411_v63 = vld [vmem:[%s2228_s11 + $0x70] sm:$0xff]  ;;  %v446_v0 = vld [vmem:[%s2233_s12 + $0x88] sm:$0xff]  ;;  %v546_v1 = vadd.f32 %v545_v52, %v439_v45  ;;  %v1480_v8 = vpack.c.bf16 %v443_v58, %v441_v57 }
  0xaa   : > { %1443 = vmatprep.subr.bf16.mxu0 %v1442_v44  ;;  %v448_v3 = vld [vmem:[%s2233_s12 + $0x98] sm:$0xff]  ;;  %v414_v4 = vld [vmem:[%s2228_s11 + $0x88] sm:$0xff]  ;;  %v1448_v9 = vpack.c.bf16 %v411_v63, %v409_v62  ;;  %v579_v10 = vsel %vm563_vm0, %v446_v0, 0.0  ;;  %v445_v11 = vld [vmem:[%s2233_s12 + $0x80] sm:$0xff] }
  0xab   : > { %v416_v5 = vld [vmem:[%s2228_s11 + $0x98] sm:$0xff]  ;;  %v576_v6 = vadd.f32 %v575_v55, %v574_v59  ;;  %1477 = vmatpush1.bf16.msra.mxu1 %v1476_v53  ;;  %v547_v7 = vadd.f32 %v546_v1, %v441_v57  ;;  %v447_v12 = vld [vmem:[%s2233_s12 + $0x90] sm:$0xff]  ;;  %v1482_v14 = vpack.c.bf16 %v448_v3, %v446_v0  ;;  %v413_v16 = vld [vmem:[%s2228_s11 + $0x80] sm:$0xff]  ;;  %v581_v20 = vsel %vm563_vm0, %v448_v3, 0.0 }
  0xac   : > { %1479 = vmatprep.subr.bf16.mxu1 %v1478_v60  ;;  %v1450_v15 = vpack.c.bf16 %v416_v5, %v414_v4  ;;  %v415_v17 = vld [vmem:[%s2228_s11 + $0x90] sm:$0xff]  ;;  %v450_v18 = vld [vmem:[%s2233_s12 + $0xa8] sm:$0xff]  ;;  %v452_v21 = vld [vmem:[%s2233_s12 + $0xb8] sm:$0xff]  ;;  %v1484_v26 = vpack.c.bf16 %v447_v12, %v445_v11 }
  0xad   : > { %1445 = vmatpush1.bf16.msra.mxu0 %v1444_v54  ;;  %v578_v13 = vadd.f32 %v577_v2, %v576_v6  ;;  %v548_v19 = vadd.f32 %v547_v7, %v443_v58  ;;  %v418_v22 = vld [vmem:[%s2228_s11 + $0xa8] sm:$0xff]  ;;  %v420_v23 = vld [vmem:[%s2228_s11 + $0xb8] sm:$0xff]  ;;  %v1452_v27 = vpack.c.bf16 %v415_v17, %v413_v16  ;;  %v583_v28 = vsel %vm563_vm0, %v450_v18, 0.0  ;;  %v449_v29 = vld [vmem:[%s2233_s12 + $0xa0] sm:$0xff] }
  0xae   : > { %1447 = vmatprep.subr.bf16.mxu0 %v1446_v61  ;;  %v451_v30 = vld [vmem:[%s2233_s12 + $0xb0] sm:$0xff]  ;;  %v1486_v32 = vpack.c.bf16 %v452_v21, %v450_v18  ;;  %v1454_v33 = vpack.c.bf16 %v420_v23, %v418_v22  ;;  %v417_v34 = vld [vmem:[%s2228_s11 + $0xa0] sm:$0xff]  ;;  %v454_v36 = vld [vmem:[%s2233_s12 + $0xc8] sm:$0xff]  ;;  %v585_v38 = vsel %vm563_vm0, %v452_v21, 0.0 }
  0xaf   : > { %v580_v24 = vadd.f32 %v579_v10, %v578_v13  ;;  %1481 = vmatpush1.bf16.msra.mxu1 %v1480_v8  ;;  %v549_v25 = vadd.f32 %v548_v19, %v445_v11  ;;  %v419_v35 = vld [vmem:[%s2228_s11 + $0xb0] sm:$0xff]  ;;  %v456_v39 = vld [vmem:[%s2233_s12 + $0xd8] sm:$0xff]  ;;  %v422_v40 = vld [vmem:[%s2228_s11 + $0xc8] sm:$0xff]  ;;  %v1488_v44 = vpack.c.bf16 %v451_v30, %v449_v29  ;;  %v587_v46 = vsel %vm563_vm0, %v454_v36, 0.0 }
  0xb0   : > { %1483 = vmatprep.subr.bf16.mxu1 %v1482_v14  ;;  %v424_v41 = vld [vmem:[%s2228_s11 + $0xd8] sm:$0xff]  ;;  %v1456_v45 = vpack.c.bf16 %v419_v35, %v417_v34  ;;  %v453_v47 = vld [vmem:[%s2233_s12 + $0xc0] sm:$0xff]  ;;  %v455_v48 = vld [vmem:[%s2233_s12 + $0xd0] sm:$0xff]  ;;  %v1490_v51 = vpack.c.bf16 %v456_v39, %v454_v36  ;;  %v589_v57 = vsel %vm563_vm0, %v456_v39, 0.0 }
  0xb1   : > { %1449 = vmatpush1.bf16.msra.mxu0 %v1448_v9  ;;  %v582_v31 = vadd.f32 %v581_v20, %v580_v24  ;;  %v550_v37 = vadd.f32 %v549_v25, %v447_v12  ;;  %v421_v49 = vld [vmem:[%s2228_s11 + $0xc0] sm:$0xff]  ;;  %v1458_v52 = vpack.c.bf16 %v424_v41, %v422_v40  ;;  %v423_v53 = vld [vmem:[%s2228_s11 + $0xd0] sm:$0xff]  ;;  %v458_v54 = vld [vmem:[%s2233_s12 + $0xe8] sm:$0xff]  ;;  %v1492_v63 = vpack.c.bf16 %v455_v48, %v453_v47 }
  0xb2   : > { %1451 = vmatprep.subr.bf16.mxu0 %v1450_v15  ;;  %v601_v55 = vld [vmem:[%s2844_s5] sm:$0xf]  ;;  %v460_v58 = vld [vmem:[%s2233_s12 + $0xf8] sm:$0xff]  ;;  %v426_v59 = vld [vmem:[%s2228_s11 + $0xe8] sm:$0xff]  ;;  %v1460_v0 = vpack.c.bf16 %v423_v53, %v421_v49  ;;  %v591_v1 = vsel %vm563_vm0, %v458_v54, 0.0 }
  0xb3   : > { %v584_v42 = vadd.f32 %v583_v28, %v582_v31  ;;  %1485 = vmatpush1.bf16.msra.mxu1 %v1484_v26  ;;  %v551_v43 = vadd.f32 %v550_v37, %v449_v29  ;;  %v428_v60 = vld [vmem:[%s2228_s11 + $0xf8] sm:$0xff]  ;;  %604 = vperm.xlu0 %1705, %v601_v55   ;;  %v457_v2 = vld [vmem:[%s2233_s12 + $0xe0] sm:$0xff]  ;;  %v1494_v4 = vpack.c.bf16 %v460_v58, %v458_v54  ;;  %v459_v6 = vld [vmem:[%s2233_s12 + $0xf0] sm:$0xff]  ;;  %v593_v10 = vsel %vm563_vm0, %v460_v58, 0.0 }
  0xb4   : > { %1487 = vmatprep.subr.bf16.mxu1 %v1486_v32  ;;  %v1462_v5 = vpack.c.bf16 %v428_v60, %v426_v59  ;;  %v425_v7 = vld [vmem:[%s2228_s11 + $0xe0] sm:$0xff]  ;;  %v427_v8 = vld [vmem:[%s2228_s11 + $0xf0] sm:$0xff]  ;;  %v1496_v13 = vpack.c.bf16 %v459_v6, %v457_v2  ;;  %v541_v17 = vld [vmem:[#allocation8] sm:$0xf] }
  0xb5   : > { %1453 = vmatpush1.bf16.msra.mxu0 %v1452_v27  ;;  %v586_v50 = vadd.f32 %v585_v38, %v584_v42  ;;  %v552_v56 = vadd.f32 %v551_v43, %v451_v30  ;;  %v1464_v14 = vpack.c.bf16 %v427_v8, %v425_v7  ;;  %v461_v18 = vld [vmem:[#allocation6] sm:$0xf]  ;;  %vm539_vm3 = vmor %vm538_vm2, %vm537_vm1 }
  0xb6   : > { %1455 = vmatprep.subr.bf16.mxu0 %v1454_v33 }
  0xb7   : > { %v588_v61 = vadd.f32 %v587_v46, %v586_v50  ;;  %1489 = vmatpush1.bf16.msra.mxu1 %v1488_v44  ;;  %v553_v62 = vadd.f32 %v552_v56, %v453_v47 }
  0xb8   : > { %1491 = vmatprep.subr.bf16.mxu1 %v1490_v51 }
  0xb9   : > { %1457 = vmatpush1.bf16.msra.mxu0 %v1456_v45  ;;  %v590_v3 = vadd.f32 %v589_v57, %v588_v61  ;;  %v554_v9 = vadd.f32 %v553_v62, %v455_v48 }
  0xba   : > { %1459 = vmatprep.subr.bf16.mxu0 %v1458_v52 }
  0xbb   : > { %v592_v11 = vadd.f32 %v591_v1, %v590_v3  ;;  %1493 = vmatpush1.bf16.msra.mxu1 %v1492_v63  ;;  %v555_v12 = vadd.f32 %v554_v9, %v457_v2 }
  0xbc   : > { %1495 = vmatprep.subr.bf16.mxu1 %v1494_v4 }
  0xbd   : > { %1461 = vmatpush1.bf16.msra.mxu0 %v1460_v0  ;;  %v594_v15 = vadd.f32 %v593_v10, %v592_v11  ;;  %v556_v16 = vadd.f32 %v555_v12, %v459_v6 }
  0xbe   : > { %1463 = vmatprep.subr.bf16.mxu0 %v1462_v5 }
  0xbf   : > { %1497 = vmatpush1.bf16.msra.mxu1 %v1496_v13  ;;  %v557_v19 = vrot.slane %v556_v16, 4  ;;  %v595_v20 = vrot.slane %v594_v15, 4 }
  0xc1   : > { %1465 = vmatpush1.bf16.msra.mxu0 %v1464_v14  ;;  %v558_v21 = vadd.f32 %v557_v19, %v556_v16  ;;  %v596_v22 = vadd.f32 %v595_v20, %v594_v15 }
  0xc2   : > { %674 = vmatmul.mubr.f32.vlgmr.msra.gmra.mrb[0].mxu1 %v541_v17 }
  0xc3   : > { %v559_v23 = vrot.slane %v558_v21, 2  ;;  %v597_v24 = vrot.slane %v596_v22, 2 }
  0xc4   : > { %527 = vmatmul.mubr.f32.vlgmr.msra.gmra.mrb[0].mxu0 %v461_v18 }
  0xc5   : > { %v560_v25 = vadd.f32 %v559_v23, %v558_v21  ;;  %v598_v26 = vadd.f32 %v597_v24, %v596_v22 }
  0xc7   : > { %v561_v27 = vrot.slane %v560_v25, 1  ;;  %v599_v28 = vrot.slane %v598_v26, 1 }
  0xc9   : > { %v562_v29 = vadd.f32 %v561_v27, %v560_v25  ;;  %v600_v31 = vadd.f32 %v599_v28, %v598_v26 }
 0x132   : > { %v605_v30 = vpop.permute.xlu0 %604 }
 0x133   : > { %v607_v32 = vmul.f32 %v605_v30, %v562_v29  ;;  %v608_v33 = vmul.f32 %v605_v30, %v600_v31 }
 0x195   : > { %v675_v34 = vpop.f32.mrb[0].mxu1 }
 0x196   : > { %v676_v36 = vadd.f32 %v675_v34, %v607_v32  ;;  %v677_v37 = vpop.f32.mrb[1].mxu1 }
 0x197   : > { %v528_v35 = vpop.f32.mrb[0].mxu0  ;;  %v678_v39 = vadd.f32 %v677_v37, %v608_v33 }
 0x198   : > { %v530_v38 = vpop.f32.mrb[1].mxu0 }
 0x199   : > { %v535_v40 = vcombine.low %v528_v35, %v530_v38  ;;  %v682_v41 = vcombine.low %v676_v36, %v678_v39 }
 0x19b   : > { %540 = vst.msk [vmem:[%s373_s14] sm:$0xff] %vm539_vm3, %v535_v40  ;;  %684 = vst.msk [vmem:[#allocation2] sm:$0xff] %vm539_vm3, %v682_v41 }
 0x19c PF: > { %v692_v42 = vld [vmem:[%s2228_s11 + $0x8] sm:$0xff]  ;;  %v694_v43 = vld [vmem:[%s2228_s11 + $0x18] sm:$0xff]  ;;  %v691_v44 = vld [vmem:[%s2228_s11] sm:$0xff]  ;;  %v1931_v49 = vmov 0.0   ;;  %s1432_s6 = sshll.u32 %s1910_s8, 7  ;;  %s1161_s27 = sshll.u32 %s373_s14, 4  ;;  %s1162_s27 = int_to_ptr.vmem [resolvable:$true] %s1161_s27 }
 0x19d   : > { %v1498_v45 = vpack.c.bf16 %v694_v43, %v692_v42  ;;  %v693_v46 = vld [vmem:[%s2228_s11 + $0x10] sm:$0xff]  ;;  %v696_v47 = vld [vmem:[%s2228_s11 + $0x28] sm:$0xff]  ;;  %v698_v48 = vld [vmem:[%s2228_s11 + $0x38] sm:$0xff]  ;;  %787 = vmatprep.mubr.f32.mxu0 %v1931_v49  ;;  %805 = vmatprep.mubr.f32.mxu1 %v1931_v49  ;;  %s2898_s15 = sld [smem:[#allocation36_spill]]  ;;  %s1142_s12 = scalar_lea.sflag [#allocation5], %s371_s9 }
 0x19e   : > { %v1500_v50 = vpack.c.bf16 %v693_v46, %v691_v44  ;;  %v1502_v51 = vpack.c.bf16 %v698_v48, %v696_v47  ;;  %v695_v52 = vld [vmem:[%s2228_s11 + $0x20] sm:$0xff]  ;;  %v697_v53 = vld [vmem:[%s2228_s11 + $0x30] sm:$0xff]  ;;  %v700_v54 = vld [vmem:[%s2228_s11 + $0x48] sm:$0xff]  ;;  %s1792_s24 = scalar_lea.vmem %s1162_s27, 128  ;;  %p2899_p9 = scmp.ne.s32.totalorder %s2877_s19, 0 }
 0x19f   : > { %1499 = vmatprep.subr.bf16.mxu0 %v1498_v45  ;;  %1530 = vmatprep.subr.bf16.mxu1 %v1498_v45  ;;  %v702_v55 = vld [vmem:[%s2228_s11 + $0x58] sm:$0xff]  ;;  %v1504_v56 = vpack.c.bf16 %v697_v53, %v695_v52  ;;  %v699_v58 = vld [vmem:[%s2228_s11 + $0x40] sm:$0xff]  ;;  %v701_v59 = vld [vmem:[%s2228_s11 + $0x50] sm:$0xff]  ;;  %p1793_p2 = scmp.ne.s32.totalorder %s1162_s27, %s1792_s24  ;;  %s1932_s13 = smov [#allocation9]  }
 0x1a0   : > { %1501 = vmatpush1.bf16.msra.mxu0 %v1500_v50  ;;  %1538 = vmatpush1.bf16.msra.mxu1 %v1500_v50  ;;  %v1506_v57 = vpack.c.bf16 %v702_v55, %v700_v54  ;;  %v704_v60 = vld [vmem:[%s2228_s11 + $0x68] sm:$0xff]  ;;  %v706_v61 = vld [vmem:[%s2228_s11 + $0x78] sm:$0xff]  ;;  %v1508_v62 = vpack.c.bf16 %v701_v59, %v699_v58  ;;  %v703_v0 = vld [vmem:[%s2228_s11 + $0x60] sm:$0xff] }
 0x1a1   : > { %1503 = vmatprep.subr.bf16.mxu0 %v1502_v51  ;;  %1531 = vmatprep.subr.bf16.mxu1 %v1502_v51  ;;  %v1510_v63 = vpack.c.bf16 %v706_v61, %v704_v60  ;;  %v705_v1 = vld [vmem:[%s2228_s11 + $0x70] sm:$0xff]  ;;  %v708_v2 = vld [vmem:[%s2228_s11 + $0x88] sm:$0xff]  ;;  %v710_v3 = vld [vmem:[%s2228_s11 + $0x98] sm:$0xff]  ;;  %p1794_p12 = pnand %p1793_p2, %p2899_p9 }
 0x1a2   : > { %v1512_v4 = vpack.c.bf16 %v705_v1, %v703_v0  ;;  %v854_v5 = vld [vmem:[%s2844_s5] sm:$0xf]  ;;  %v1514_v6 = vpack.c.bf16 %v710_v3, %v708_v2  ;;  %v709_v8 = vld [vmem:[%s2228_s11 + $0x90] sm:$0xff]  ;;  %v712_v12 = vld [vmem:[%s2228_s11 + $0xa8] sm:$0xff] }
 0x1a3   : > { %v707_v7 = vld [vmem:[%s2228_s11 + $0x80] sm:$0xff]  ;;  %1550 = vpush %v854_v5  ;;  %v928_v9 = vrot.slane %v854_v5, 1  ;;  %v999_v10 = vrot.slane %v854_v5, 2  ;;  %v1070_v11 = vrot.slane %v854_v5, 3  ;;  %v714_v13 = vld [vmem:[%s2228_s11 + $0xb8] sm:$0xff]  ;;  %v713_v17 = vld [vmem:[%s2228_s11 + $0xb0] sm:$0xff]  ;;  %s2377_s21 = scalar_lea.hbm %s2898_s15, %s1432_s6  ;;  %p1795_p7 = pneg %p1794_p12 }
 0x1a4   : > { %1505 = vmatpush1.bf16.msra.mxu0 %v1504_v56  ;;  %1539 = vmatpush1.bf16.msra.mxu1 %v1504_v56  ;;  %v1516_v14 = vpack.c.bf16 %v709_v8, %v707_v7  ;;  %v1518_v15 = vpack.c.bf16 %v714_v13, %v712_v12  ;;  %v711_v16 = vld [vmem:[%s2228_s11 + $0xa0] sm:$0xff]  ;;  %v716_v18 = vld [vmem:[%s2228_s11 + $0xc8] sm:$0xff]  ;;  %v718_v19 = vld [vmem:[%s2228_s11 + $0xd8] sm:$0xff] }
 0x1a5   : > { %1507 = vmatprep.subr.bf16.mxu0 %v1506_v57  ;;  %1532 = vmatprep.subr.bf16.mxu1 %v1506_v57  ;;  %1552 = vpush %v928_v9  ;;  %v1520_v20 = vpack.c.bf16 %v713_v17, %v711_v16  ;;  %v1522_v21 = vpack.c.bf16 %v718_v19, %v716_v18  ;;  %v715_v22 = vld [vmem:[%s2228_s11 + $0xc0] sm:$0xff]  ;;  %v717_v23 = vld [vmem:[%s2228_s11 + $0xd0] sm:$0xff]  ;;  %v720_v24 = vld [vmem:[%s2228_s11 + $0xe8] sm:$0xff] }
 0x1a6   : > { %1554 = vpush %v999_v10  ;;  %v722_v25 = vld [vmem:[%s2228_s11 + $0xf8] sm:$0xff]  ;;  %v1524_v26 = vpack.c.bf16 %v717_v23, %v715_v22  ;;  %v719_v28 = vld [vmem:[%s2228_s11 + $0xe0] sm:$0xff]  ;;  %v721_v29 = vld [vmem:[%s2228_s11 + $0xf0] sm:$0xff] }
 0x1a7   : > { %1556 = vpush %v1070_v11  ;;  %v1526_v27 = vpack.c.bf16 %v722_v25, %v720_v24  ;;  %v1528_v30 = vpack.c.bf16 %v721_v29, %v719_v28  ;;  %v685_v31 = vld [vmem:[%s2207_s7] sm:$0xff]  ;;  %v688_v32 = vld [vmem:[%s2207_s7 + $0x18] sm:$0xff]  ;;  %v686_v33 = vld [vmem:[%s2207_s7 + $0x8] sm:$0xff] }
 0x1a8   : > { %1509 = vmatpush1.bf16.msra.mxu0 %v1508_v62  ;;  %1540 = vmatpush1.bf16.msra.mxu1 %v1508_v62  ;;  %v689_v34 = vld [vmem:[%s2207_s7 + $0x20] sm:$0xff]  ;;  %v687_v35 = vld [vmem:[%s2207_s7 + $0x10] sm:$0xff]  ;;  %v690_v36 = vld [vmem:[%s2207_s7 + $0x28] sm:$0xff]  ;;  %s1796_s7 = sshll.u32 %s1932_s13, 4  ;;  %s1797_s7 = int_to_ptr.vmem [resolvable:$false] %s1796_s7 }
 0x1a9   : > { %1511 = vmatprep.subr.bf16.mxu0 %v1510_v63  ;;  %1533 = vmatprep.subr.bf16.mxu1 %v1510_v63  ;;  %s1798_s16 = scalar_lea.vmem %s1797_s7, 256  ;;  %p1799_p3 = scmp.lt.s32.totalorder %s1162_s27, %s1797_s7 }
 0x1aa   : > { %p1800_p4 = scmp.lt.s32.totalorder %s1798_s16, %s1792_s24 }
 0x1ac   : > { %1513 = vmatpush1.bf16.msra.mxu0 %v1512_v4  ;;  %1541 = vmatpush1.bf16.msra.mxu1 %v1512_v4  ;;  %p1801_p13 = por %p1800_p4, %p1799_p3 }
 0x1ad   : > { %1515 = vmatprep.subr.bf16.mxu0 %v1514_v6  ;;  %1534 = vmatprep.subr.bf16.mxu1 %v1514_v6 }
 0x1ae   : > { %p1802_p6 = pnand %p1801_p13, %p1795_p7 }
 0x1b0   : > { %1517 = vmatpush1.bf16.msra.mxu0 %v1516_v14  ;;  %1542 = vmatpush1.bf16.msra.mxu1 %v1516_v14 }
 0x1b1   : > { %1519 = vmatprep.subr.bf16.mxu0 %v1518_v15  ;;  %1535 = vmatprep.subr.bf16.mxu1 %v1518_v15 }
 0x1b4   : > { %1521 = vmatpush1.bf16.msra.mxu0 %v1520_v20  ;;  %1543 = vmatpush1.bf16.msra.mxu1 %v1520_v20 }
 0x1b5   : > { %1523 = vmatprep.subr.bf16.mxu0 %v1522_v21  ;;  %1536 = vmatprep.subr.bf16.mxu1 %v1522_v21 }
 0x1b8   : > { %1525 = vmatpush1.bf16.msra.mxu0 %v1524_v26  ;;  %1544 = vmatpush1.bf16.msra.mxu1 %v1524_v26 }
 0x1b9   : > { %1527 = vmatprep.subr.bf16.mxu0 %v1526_v27  ;;  %1537 = vmatprep.subr.bf16.mxu1 %v1526_v27 }
 0x1bc   : > { %1529 = vmatpush1.bf16.msra.mxu0 %v1528_v30  ;;  %1545 = vmatpush1.bf16.msra.mxu1 %v1528_v30 }
 0x1bf   : > { %788 = vmatmul.mubr.f32.vlgmr.msra.gmra.mrb[0].mxu0 %v685_v31  ;;  %806 = vmatmul.mubr.f32.vlgmr.msra.gmra.mrb[0].mxu1 %v688_v32 }
 0x1c0   : > { %793 = vmatprep.mubr.f32.mxu0 %v1931_v49  ;;  %811 = vmatprep.mubr.f32.mxu1 %v1931_v49 }
 0x1c3   : > { %794 = vmatmul.mubr.f32.gmra.mrb[2].mxu0 %v686_v33  ;;  %812 = vmatmul.mubr.f32.gmra.mrb[2].mxu1 %v689_v34 }
 0x1c4   : > { %799 = vmatprep.mubr.f32.mxu0 %v1931_v49  ;;  %817 = vmatprep.mubr.f32.mxu1 %v1931_v49 }
 0x1c7   : > { %800 = vmatmul.mubr.f32.gmra.mrb[4].mxu0 %v687_v35  ;;  %818 = vmatmul.mubr.f32.gmra.mrb[4].mxu1 %v690_v36 }
 0x1c8   : > { %1805 = shalt.err (!%p1802_p6)
}
 0x1c9   : > { %s1806_s9 = scalar_lea.hbm %s2377_s21, 128  ;;  %s1810_s18 = scalar_lea.hbm %s2898_s15, 256 }
 0x1ca   : > { %p1807_p1 = scmp.ne.s32.totalorder %s2377_s21, %s1806_s9  ;;  %p1811_p10 = scmp.lt.u32.totalorder %s2377_s21, %s2898_s15 }
 0x1cb   : > { %p1812_p0 = scmp.lt.u32.totalorder %s1810_s18, %s1806_s9  ;;  %p1814_p2 = scmp.lt.u32.totalorder %s1806_s9, %s2377_s21 }
 0x1cc   : > { %p1808_p11 = pnand %p1807_p1, %p2899_p9 }
 0x1cd   : > { %p1813_p5 = por %p1812_p0, %p1811_p10 }
 0x1ce   : > { %p1809_p8 = pneg %p1808_p11 }
 0x1cf   : > { %p1815_p12 = por %p1814_p2, %p1813_p5 }
 0x1d1   : > { %p1816_p7 = pnand %p1815_p12, %p1809_p8 }
 0x1d3   : > { %1819 = shalt.err (!%p1816_p7)
}
 0x1d4   : > { %1569 = dma.vmem_to_hbm [thread:$0]  (%p2899_p9), %s1162_s27, 128, %s2377_s21, %s1142_s12   ;;  %v825_v37 = vlaneseq  ;;  %v855_v41 = vld [vmem:[#allocation2] sm:$0xff]  ;;  %vm916_vm0 = vcmask 130048  }
 0x1d5   : > { %s824_s11 = smul.u32 48, %s1906_s30  ;;  %s1551_s24 = spop %1550 }
 0x1d6   : > { %v826_v38 = vshrl.u32 %v825_v37, 7  ;;  %s1553_s13 = spop %1552  ;;  %v2402_v50 = vand.u32 127, %v825_v37  ;;  %v2404_v55 = vstv %s1551_s24  ;;  %s1147_s21 = scalar_lea.sflag [#allocation11], %s2203_s4 }
 0x1d7   : > { %v2399_v43 = vstv %s824_s11  ;;  %s1555_s19 = spop %1554  ;;  %v2417_v1 = vstv %s1553_s13 }
 0x1d8   : > { %v875_v39 = vsub.s32 0, %v826_v38  ;;  %v946_v40 = vsub.s32 1, %v826_v38  ;;  %v1017_v42 = vsub.s32 2, %v826_v38  ;;  %v1088_v44 = vsub.s32 3, %v826_v38  ;;  %s1557_s27 = spop %1556 }
 0x1d9   : > { %v829_v45 = vadd.s32 24, %v826_v38  ;;  %v879_v48 = vsub.s32 4, %v826_v38  ;;  %v833_v49 = vadd.s32 %v2399_v43, %v826_v38  ;;  %v950_v52 = vsub.s32 5, %v826_v38 }
 0x1da   : > { %v876_v46 = vrot.slane %v855_v41, %v875_v39  ;;  %v947_v47 = vrot.slane %v855_v41, %v946_v40  ;;  %v1018_v51 = vrot.slane %v855_v41, %v1017_v42  ;;  %v1021_v53 = vsub.s32 6, %v826_v38 }
 0x1db   : > { %v1092_v54 = vsub.s32 7, %v826_v38  ;;  %v1089_v56 = vrot.slane %v855_v41, %v1088_v44  ;;  %v836_v57 = vadd.s32 %v2399_v43, %v829_v45  ;;  %v880_v60 = vrot.slane %v855_v41, %v879_v48 }
 0x1dc   : > { %v2407_v58 = vrot.slane %v876_v46, %v875_v39  ;;  %v2409_v59 = vrot.slane %v947_v47, %v946_v40  ;;  %v827_v61 = vadd.s32 8, %v826_v38  ;;  %vm842_vm4 = vcmp.eq.s32.totalorder %v833_v49, %v2402_v50 }
 0x1dd   : > { %v2412_v62 = vrot.slane %v1018_v51, %v1017_v42  ;;  %v2415_v63 = vadd.s32 128, %v2402_v50  ;;  %v951_v0 = vrot.slane %v855_v41, %v950_v52  ;;  %v1022_v2 = vrot.slane %v855_v41, %v1021_v53 }
 0x1de   : > { %v1093_v3 = vrot.slane %v855_v41, %v1092_v54  ;;  %v830_v4 = vadd.s32 32, %v826_v38  ;;  %v2419_v5 = vstv %s1555_s19  ;;  %v2421_v6 = vstv %s1557_s27 }
 0x1df   : > { %v1099_v7 = vrot.slane %v1089_v56, %v1088_v44  ;;  %vm848_vm5 = vcmp.eq.s32.totalorder %v836_v57, %v2402_v50  ;;  %v2427_v8 = vsel %vm842_vm4, %v2407_v58, 0.0  ;;  %v2432_v9 = vsel %vm842_vm4, %v2409_v59, 0.0 }
 0x1e0   : > { %v2434_v10 = vrot.slane %v880_v60, %v875_v39  ;;  %v834_v11 = vadd.s32 %v2399_v43, %v827_v61  ;;  %v2440_v12 = vsel %vm842_vm4, %v2412_v62, 0.0  ;;  %vm843_vm6 = vcmp.eq.s32.totalorder %v833_v49, %v2415_v63 }
 0x1e1   : > { %v961_v13 = vrot.slane %v951_v0, %v946_v40  ;;  %v828_v14 = vadd.s32 16, %v826_v38  ;;  %v1032_v15 = vrot.slane %v1022_v2, %v1017_v42  ;;  %v1103_v16 = vrot.slane %v1093_v3, %v1088_v44 }
 0x1e2   : > { %vm849_vm7 = vcmp.eq.s32.totalorder %v836_v57, %v2415_v63  ;;  %v837_v17 = vadd.s32 %v2399_v43, %v830_v4  ;;  %v2447_v18 = vsel %vm842_vm4, %v1099_v7, 0.0  ;;  %v2452_v19 = vsel %vm848_vm5, %v2407_v58, 0.0 }
 0x1e3   : > { %v2457_v20 = vsel %vm848_vm5, %v2409_v59, 0.0  ;;  %v831_v21 = vadd.s32 40, %v826_v38  ;;  %v2462_v22 = vsel %vm848_vm5, %v2412_v62, 0.0  ;;  %v2466_v23 = vsel %vm848_vm5, %v1099_v7, 0.0 }
 0x1e4   : > { %v2471_v24 = vsel %vm843_vm6, %v2434_v10, 0.0  ;;  %vm844_vm8 = vcmp.eq.s32.totalorder %v834_v11, %v2402_v50  ;;  %v2476_v25 = vsel %vm843_vm6, %v961_v13, 0.0  ;;  %v2481_v26 = vsel %vm849_vm7, %v2434_v10, 0.0 }
 0x1e5   : > { %v2485_v27 = vsel %vm849_vm7, %v961_v13, 0.0  ;;  %v835_v28 = vadd.s32 %v2399_v43, %v828_v14  ;;  %v2490_v29 = vsel %vm843_vm6, %v1032_v15, 0.0  ;;  %v2494_v30 = vsel %vm843_vm6, %v1103_v16, 0.0 }
 0x1e6   : > { %v2498_v31 = vsel %vm849_vm7, %v1032_v15, 0.0  ;;  %vm850_vm9 = vcmp.eq.s32.totalorder %v837_v17, %v2402_v50  ;;  %v2503_v32 = vsel %vm849_vm7, %v1103_v16, 0.0  ;;  %v2506_v33 = vsel %vm844_vm8, %v2407_v58, 0.0 }
 0x1e7   : > { %vm845_vm10 = vcmp.eq.s32.totalorder %v834_v11, %v2415_v63  ;;  %v838_v34 = vadd.s32 %v2399_v43, %v831_v21  ;;  %v2511_v35 = vsel %vm844_vm8, %v2409_v59, 0.0  ;;  %v2514_v36 = vsel %vm844_vm8, %v2412_v62, 0.0 }
 0x1e8   : > { %v2516_v37 = vsel %vm844_vm8, %v1099_v7, 0.0  ;;  %vm851_vm11 = vcmp.eq.s32.totalorder %v837_v17, %v2415_v63  ;;  %v2520_v38 = vsel %vm850_vm9, %v2407_v58, 0.0  ;;  %v2523_v39 = vsel %vm850_vm9, %v2409_v59, 0.0 }
 0x1e9   : > { %v2526_v40 = vsel %vm850_vm9, %v2412_v62, 0.0  ;;  %vm846_vm12 = vcmp.eq.s32.totalorder %v835_v28, %v2402_v50  ;;  %v2529_v41 = vsel %vm850_vm9, %v1099_v7, 0.0  ;;  %v2532_v42 = vsel %vm845_vm10, %v2434_v10, 0.0 }
 0x1ea   : > { %v2534_v43 = vsel %vm845_vm10, %v961_v13, 0.0  ;;  %v2536_v44 = vsel %vm845_vm10, %v1032_v15, 0.0  ;;  %v2538_v45 = vsel %vm845_vm10, %v1103_v16, 0.0  ;;  %v2541_v46 = vsel %vm851_vm11, %v2434_v10, 0.0 }
 0x1eb   : > { %v2543_v47 = vsel %vm851_vm11, %v961_v13, 0.0  ;;  %vm852_vm13 = vcmp.eq.s32.totalorder %v838_v34, %v2402_v50  ;;  %v2546_v48 = vsel %vm851_vm11, %v1032_v15, 0.0  ;;  %v2548_v49 = vsel %vm851_vm11, %v1103_v16, 0.0 }
 0x1ec   : > { %v2551_v51 = vsel %vm846_vm12, %v2407_v58, 0.0  ;;  %vm847_vm14 = vcmp.eq.s32.totalorder %v835_v28, %v2415_v63  ;;  %v2555_v52 = vsel %vm846_vm12, %v2409_v59, 0.0  ;;  %v2558_v53 = vsel %vm846_vm12, %v2412_v62, 0.0 }
 0x1ed   : > { %v2560_v54 = vsel %vm846_vm12, %v1099_v7, 0.0  ;;  %vm853_vm15 = vcmp.eq.s32.totalorder %v838_v34, %v2415_v63  ;;  %v2564_v50 = vsel %vm852_vm13, %v2407_v58, 0.0  ;;  %v2567_v56 = vsel %vm852_vm13, %v2409_v59, 0.0 }
 0x1ee   : > { %v2570_v57 = vsel %vm852_vm13, %v2412_v62, 0.0  ;;  %v2572_v60 = vsel %vm852_vm13, %v1099_v7, 0.0  ;;  %v2575_v61 = vsel %vm847_vm14, %v2434_v10, 0.0  ;;  %v2577_v0 = vsel %vm847_vm14, %v961_v13, 0.0 }
 0x1ef   : > { %2900 = vst [vmem:[#allocation27_spill] sm:$0xff] %v2577_v0  ;;  %v2579_v2 = vsel %vm847_vm14, %v1032_v15, 0.0  ;;  %v2581_v63 = vsel %vm847_vm14, %v1103_v16, 0.0  ;;  %v2584_v4 = vsel %vm853_vm15, %v2434_v10, 0.0  ;;  %v2586_v59 = vsel %vm853_vm15, %v961_v13, 0.0 }
 0x1f0   : > { %2901 = vst [vmem:[#allocation28_spill] sm:$0xff] %v2579_v2  ;;  %2902 = vst [vmem:[#allocation29_spill] sm:$0xff] %v2581_v63  ;;  %v2588_v62 = vsel %vm853_vm15, %v1032_v15, 0.0  ;;  %v2590_v7 = vsel %vm853_vm15, %v1103_v16, 0.0 }
 0x1f1   : > { %2903 = vst [vmem:[#allocation30_spill] sm:$0xff] %v2584_v4  ;;  %2904 = vst [vmem:[#allocation31_spill] sm:$0xff] %v2586_v59 }
 0x1f2   : > { %2905 = vst [vmem:[#allocation32_spill] sm:$0xff] %v2588_v62  ;;  %2906 = vst [vmem:[#allocation33_spill] sm:$0xff] %v2590_v7 }
 0x292   : > { %v789_v3 = vpop.f32.mrb[0].mxu0  ;;  %v807_v58 = vpop.f32.mrb[0].mxu1 }
 0x293   : > { %v860_v11 = vmul.f32 %v2404_v55, %v789_v3  ;;  %v932_v14 = vmul.f32 %v2417_v1, %v789_v3  ;;  %v1003_v17 = vmul.f32 %v2419_v5, %v789_v3  ;;  %v1074_v21 = vmul.f32 %v2421_v6, %v789_v3  ;;  %v791_v28 = vpop.f32.mrb[1].mxu0  ;;  %v809_v34 = vpop.f32.mrb[1].mxu1 }
 0x294   : > { %v866_v10 = vmul.f32 %v2404_v55, %v807_v58  ;;  %v938_v13 = vmul.f32 %v2417_v1, %v807_v58  ;;  %v1009_v15 = vmul.f32 %v2419_v5, %v807_v58  ;;  %v1080_v16 = vmul.f32 %v2421_v6, %v807_v58 }
 0x295   : > { %v903_v7 = vadd.f32 %v2427_v8, %v860_v11  ;;  %v974_v62 = vadd.f32 %v2432_v9, %v932_v14  ;;  %v1045_v3 = vadd.f32 %v2440_v12, %v1003_v17  ;;  %v1116_v59 = vadd.f32 %v2447_v18, %v1074_v21 }
 0x296   : > { %v909_v4 = vadd.f32 %v2452_v19, %v866_v10  ;;  %v980_v63 = vadd.f32 %v2457_v20, %v938_v13  ;;  %v1051_v2 = vadd.f32 %v2462_v22, %v1009_v15  ;;  %v1122_v0 = vadd.f32 %v2466_v23, %v1080_v16  ;;  %v795_v58 = vpop.f32.mrb[2].mxu0  ;;  %v813_v8 = vpop.f32.mrb[2].mxu1 }
 0x297   : > { %915 = vst [vmem:[%s2236_s3] sm:$0xff] %v903_v7  ;;  %1387 = vst [vmem:[%s2236_s3 + $0x60] sm:$0xff] %v974_v62  ;;  %v861_v9 = vmul.f32 %v2404_v55, %v791_v28  ;;  %v933_v12 = vmul.f32 %v2417_v1, %v791_v28  ;;  %v1004_v18 = vmul.f32 %v2419_v5, %v791_v28  ;;  %v797_v20 = vpop.f32.mrb[3].mxu0  ;;  %v815_v22 = vpop.f32.mrb[3].mxu1 }
 0x298   : > { %1399 = vst [vmem:[%s2236_s3 + $0xc0] sm:$0xff] %v1045_v3  ;;  %1411 = vst [vmem:[%s2236_s3 + $0x120] sm:$0xff] %v1116_v59  ;;  %v1075_v19 = vmul.f32 %v2421_v6, %v791_v28  ;;  %v867_v23 = vmul.f32 %v2404_v55, %v809_v34  ;;  %v939_v59 = vmul.f32 %v2417_v1, %v809_v34 }
 0x299   : > { %922 = vst [vmem:[%s2236_s3 + $0x30] sm:$0xff] %v909_v4  ;;  %1393 = vst [vmem:[%s2236_s3 + $0x90] sm:$0xff] %v980_v63  ;;  %v1010_v62 = vmul.f32 %v2419_v5, %v809_v34  ;;  %v1081_v7 = vmul.f32 %v2421_v6, %v809_v34  ;;  %v904_v11 = vadd.f32 %v2471_v24, %v861_v9 }
 0x29a   : > { %1405 = vst [vmem:[%s2236_s3 + $0xf0] sm:$0xff] %v1051_v2  ;;  %1417 = vst [vmem:[%s2236_s3 + $0x150] sm:$0xff] %v1122_v0  ;;  %v975_v14 = vadd.f32 %v2476_v25, %v933_v12  ;;  %v1046_v63 = vadd.f32 %v2490_v29, %v1004_v18  ;;  %v1117_v2 = vadd.f32 %v2494_v30, %v1075_v19  ;;  %v801_v28 = vpop.f32.mrb[4].mxu0  ;;  %v2632_v24 = vpop.f32.mrb[4].mxu1 }
 0x29b   : > { %v910_v0 = vadd.f32 %v2481_v26, %v867_v23  ;;  %v981_v4 = vadd.f32 %v2485_v27, %v939_v59  ;;  %v1052_v17 = vadd.f32 %v2498_v31, %v1010_v62  ;;  %v1123_v21 = vadd.f32 %v2503_v32, %v1081_v7  ;;  %917 = vst.msk [vmem:[%s2236_s3 + $0x8] sm:$0xff] %vm916_vm0, %v904_v11  ;;  %v2646_v30 = vpop.f32.mrb[5].mxu0  ;;  %v2648_v31 = vpop.f32.mrb[5].mxu1 }
 0x29c   : > { %1388 = vst.msk [vmem:[%s2236_s3 + $0x68] sm:$0xff] %vm916_vm0, %v975_v14  ;;  %1400 = vst.msk [vmem:[%s2236_s3 + $0xc8] sm:$0xff] %vm916_vm0, %v1046_v63  ;;  %v862_v25 = vmul.f32 %v2404_v55, %v795_v58  ;;  %v934_v26 = vmul.f32 %v2417_v1, %v795_v58  ;;  %v1005_v27 = vmul.f32 %v2419_v5, %v795_v58 }
 0x29d   : > { %1412 = vst.msk [vmem:[%s2236_s3 + $0x128] sm:$0xff] %vm916_vm0, %v1117_v2  ;;  %v1076_v29 = vmul.f32 %v2421_v6, %v795_v58  ;;  %923 = vst.msk [vmem:[%s2236_s3 + $0x38] sm:$0xff] %vm916_vm0, %v910_v0  ;;  %v868_v32 = vmul.f32 %v2404_v55, %v813_v8  ;;  %v940_v34 = vmul.f32 %v2417_v1, %v813_v8 }
 0x29e   : > { %1394 = vst.msk [vmem:[%s2236_s3 + $0x98] sm:$0xff] %vm916_vm0, %v981_v4  ;;  %1406 = vst.msk [vmem:[%s2236_s3 + $0xf8] sm:$0xff] %vm916_vm0, %v1052_v17  ;;  %v1011_v10 = vmul.f32 %v2419_v5, %v813_v8  ;;  %v1082_v13 = vmul.f32 %v2421_v6, %v813_v8  ;;  %v905_v15 = vadd.f32 %v2506_v33, %v862_v25  ;;  %v2907_v25 = vld [vmem:[#allocation27_spill] sm:$0xff] }
 0x29f   : > { %1418 = vst.msk [vmem:[%s2236_s3 + $0x158] sm:$0xff] %vm916_vm0, %v1123_v21  ;;  %v976_v16 = vadd.f32 %v2511_v35, %v934_v26  ;;  %v1047_v3 = vadd.f32 %v2514_v36, %v1005_v27  ;;  %v1118_v58 = vadd.f32 %v2516_v37, %v1076_v29  ;;  %v911_v9 = vadd.f32 %v2520_v38, %v868_v32  ;;  %v2908_v27 = vld [vmem:[#allocation28_spill] sm:$0xff]  ;;  %v2909_v29 = vld [vmem:[#allocation29_spill] sm:$0xff]  ;;  %v2910_v32 = vld [vmem:[#allocation30_spill] sm:$0xff] }
 0x2a0   : > { %v982_v12 = vadd.f32 %v2523_v39, %v940_v34  ;;  %v1053_v18 = vadd.f32 %v2526_v40, %v1011_v10  ;;  %v1124_v8 = vadd.f32 %v2529_v41, %v1082_v13  ;;  %918 = vst [vmem:[%s2236_s3 + $0x10] sm:$0xff] %v905_v15  ;;  %v863_v33 = vmul.f32 %v2404_v55, %v797_v20  ;;  %v2911_v34 = vld [vmem:[#allocation31_spill] sm:$0xff]  ;;  %v2912_v13 = vld [vmem:[#allocation32_spill] sm:$0xff]  ;;  %v2913_v15 = vld [vmem:[#allocation33_spill] sm:$0xff] }
 0x2a1   : > { %1389 = vst [vmem:[%s2236_s3 + $0x70] sm:$0xff] %v976_v16  ;;  %1401 = vst [vmem:[%s2236_s3 + $0xd0] sm:$0xff] %v1047_v3  ;;  %v935_v35 = vmul.f32 %v2417_v1, %v797_v20  ;;  %v1006_v36 = vmul.f32 %v2419_v5, %v797_v20  ;;  %v1077_v37 = vmul.f32 %v2421_v6, %v797_v20 }
 0x2a2   : > { %1413 = vst [vmem:[%s2236_s3 + $0x130] sm:$0xff] %v1118_v58  ;;  %924 = vst [vmem:[%s2236_s3 + $0x40] sm:$0xff] %v911_v9  ;;  %v869_v38 = vmul.f32 %v2404_v55, %v815_v22  ;;  %v941_v39 = vmul.f32 %v2417_v1, %v815_v22  ;;  %v1012_v40 = vmul.f32 %v2419_v5, %v815_v22 }
 0x2a3   : > { %1395 = vst [vmem:[%s2236_s3 + $0xa0] sm:$0xff] %v982_v12  ;;  %1407 = vst [vmem:[%s2236_s3 + $0x100] sm:$0xff] %v1053_v18  ;;  %v1083_v41 = vmul.f32 %v2421_v6, %v815_v22  ;;  %v906_v19 = vadd.f32 %v2532_v42, %v863_v33  ;;  %v977_v20 = vadd.f32 %v2534_v43, %v935_v35 }
 0x2a4   : > { %1419 = vst [vmem:[%s2236_s3 + $0x160] sm:$0xff] %v1124_v8  ;;  %v1048_v23 = vadd.f32 %v2536_v44, %v1006_v36  ;;  %v1119_v59 = vadd.f32 %v2538_v45, %v1077_v37  ;;  %v912_v62 = vadd.f32 %v2541_v46, %v869_v38  ;;  %v983_v7 = vadd.f32 %v2543_v47, %v941_v39 }
 0x2a5   : > { %v1054_v11 = vadd.f32 %v2546_v48, %v1012_v40  ;;  %v1125_v22 = vadd.f32 %v2548_v49, %v1083_v41  ;;  %919 = vst.msk [vmem:[%s2236_s3 + $0x18] sm:$0xff] %vm916_vm0, %v906_v19  ;;  %1390 = vst.msk [vmem:[%s2236_s3 + $0x78] sm:$0xff] %vm916_vm0, %v977_v20  ;;  %v864_v42 = vmul.f32 %v2404_v55, %v801_v28 }
 0x2a6   : > { %1402 = vst.msk [vmem:[%s2236_s3 + $0xd8] sm:$0xff] %vm916_vm0, %v1048_v23  ;;  %1414 = vst.msk [vmem:[%s2236_s3 + $0x138] sm:$0xff] %vm916_vm0, %v1119_v59  ;;  %v936_v43 = vmul.f32 %v2417_v1, %v801_v28  ;;  %v1007_v44 = vmul.f32 %v2419_v5, %v801_v28  ;;  %v1078_v45 = vmul.f32 %v2421_v6, %v801_v28 }
 0x2a7   : > { %925 = vst.msk [vmem:[%s2236_s3 + $0x48] sm:$0xff] %vm916_vm0, %v912_v62  ;;  %1396 = vst.msk [vmem:[%s2236_s3 + $0xa8] sm:$0xff] %vm916_vm0, %v983_v7  ;;  %v870_v46 = vmul.f32 %v2404_v55, %v2632_v24  ;;  %v942_v47 = vmul.f32 %v2417_v1, %v2632_v24  ;;  %v1013_v48 = vmul.f32 %v2419_v5, %v2632_v24 }
 0x2a8   : > { %1408 = vst.msk [vmem:[%s2236_s3 + $0x108] sm:$0xff] %vm916_vm0, %v1054_v11  ;;  %1420 = vst.msk [vmem:[%s2236_s3 + $0x168] sm:$0xff] %vm916_vm0, %v1125_v22  ;;  %v1084_v49 = vmul.f32 %v2421_v6, %v2632_v24  ;;  %v907_v14 = vadd.f32 %v2551_v51, %v864_v42  ;;  %v978_v63 = vadd.f32 %v2555_v52, %v936_v43 }
 0x2a9   : > { %v1049_v2 = vadd.f32 %v2558_v53, %v1007_v44  ;;  %v1120_v0 = vadd.f32 %v2560_v54, %v1078_v45  ;;  %v913_v4 = vadd.f32 %v2564_v50, %v870_v46  ;;  %v984_v17 = vadd.f32 %v2567_v56, %v942_v47 }
 0x2aa   : > { %v1055_v21 = vadd.f32 %v2570_v57, %v1013_v48  ;;  %v1126_v28 = vadd.f32 %v2572_v60, %v1084_v49  ;;  %920 = vst [vmem:[%s2236_s3 + $0x20] sm:$0xff] %v907_v14  ;;  %1391 = vst [vmem:[%s2236_s3 + $0x80] sm:$0xff] %v978_v63  ;;  %v865_v51 = vmul.f32 %v2404_v55, %v2646_v30 }
 0x2ab   : > { %1403 = vst [vmem:[%s2236_s3 + $0xe0] sm:$0xff] %v1049_v2  ;;  %1415 = vst [vmem:[%s2236_s3 + $0x140] sm:$0xff] %v1120_v0  ;;  %v937_v52 = vmul.f32 %v2417_v1, %v2646_v30  ;;  %v1008_v53 = vmul.f32 %v2419_v5, %v2646_v30  ;;  %v1079_v54 = vmul.f32 %v2421_v6, %v2646_v30 }
 0x2ac   : > { %926 = vst [vmem:[%s2236_s3 + $0x50] sm:$0xff] %v913_v4  ;;  %1397 = vst [vmem:[%s2236_s3 + $0xb0] sm:$0xff] %v984_v17  ;;  %v871_v50 = vmul.f32 %v2404_v55, %v2648_v31  ;;  %v943_v56 = vmul.f32 %v2417_v1, %v2648_v31  ;;  %v1014_v57 = vmul.f32 %v2419_v5, %v2648_v31 }
 0x2ad   : > { %1409 = vst [vmem:[%s2236_s3 + $0x110] sm:$0xff] %v1055_v21  ;;  %1421 = vst [vmem:[%s2236_s3 + $0x170] sm:$0xff] %v1126_v28  ;;  %v1085_v60 = vmul.f32 %v2421_v6, %v2648_v31  ;;  %v908_v24 = vadd.f32 %v2575_v61, %v865_v51  ;;  %v979_v26 = vadd.f32 %v2907_v25, %v937_v52 }
 0x2ae   : > { %v1050_v55 = vadd.f32 %v2908_v27, %v1008_v53  ;;  %v1121_v30 = vadd.f32 %v2909_v29, %v1079_v54  ;;  %v914_v1 = vadd.f32 %v2910_v32, %v871_v50  ;;  %v985_v10 = vadd.f32 %v2911_v34, %v943_v56 }
 0x2af   : > { %v1056_v5 = vadd.f32 %v2912_v13, %v1014_v57  ;;  %v1127_v16 = vadd.f32 %v2913_v15, %v1085_v60  ;;  %921 = vst.msk [vmem:[%s2236_s3 + $0x28] sm:$0xff] %vm916_vm0, %v908_v24  ;;  %1392 = vst.msk [vmem:[%s2236_s3 + $0x88] sm:$0xff] %vm916_vm0, %v979_v26 }
 0x2b0   : > { %1404 = vst.msk [vmem:[%s2236_s3 + $0xe8] sm:$0xff] %vm916_vm0, %v1050_v55  ;;  %1416 = vst.msk [vmem:[%s2236_s3 + $0x148] sm:$0xff] %vm916_vm0, %v1121_v30 }
 0x2b1   : > { %927 = vst.msk [vmem:[%s2236_s3 + $0x58] sm:$0xff] %vm916_vm0, %v914_v1  ;;  %1398 = vst.msk [vmem:[%s2236_s3 + $0xb8] sm:$0xff] %vm916_vm0, %v985_v10 }
 0x2b2   : > { %1410 = vst.msk [vmem:[%s2236_s3 + $0x118] sm:$0xff] %vm916_vm0, %v1056_v5  ;;  %1422 = vst.msk [vmem:[%s2236_s3 + $0x178] sm:$0xff] %vm916_vm0, %v1127_v16 }
 0x2b3   : > { %s2914_s12 = sld [smem:[#allocation22_spill]]  ;;  %s1433_s7 = smul.u32 12, %s1906_s30 }
 0x2b4   : > { %s1193_s16 = sshll.u32 %s2236_s3, 4  ;;  %s1558_s9 = smul.u32 144, %s1910_s8  ;;  %s1194_s16 = int_to_ptr.vmem [resolvable:$true] %s1193_s16 }
 0x2b5   : > { %s1933_s14 = smov 1536   ;;  %s1934_s4 = smov 4608  }
 0x2b6   : > { %s1174_s23 = sadd.s32 %s1558_s9, %s1433_s7  ;;  %s2916_s11 = sld [smem:[#allocation37_spill]] }
 0x2b7   : > { %s1427_s18 = sshll.u32 %s1174_s23, 7  ;;  %s1935_s13 = smov 6  }
 0x2b8   : > { %s1936_s30 = smov 256   ;;  %s1937_s8 = smov 16  }
 0x2b9   : > { %p2915_p9 = scmp.ne.s32.totalorder %s2914_s12, 0  ;;  %s1938_s3 = smov [#allocation12]  }
 0x2ba   : > { %s1939_s19 = smov 0  }
 0x2bb   : > { %1570 = sst [smem:[#allocation13]] (%p2915_p9), %s1933_s14 }
 0x2bc   : > { %1571 = sst [smem:[#allocation13 + $0x1]] (%p2915_p9), %s1934_s4  ;;  %s1176_s24 = scalar_lea.hbm %s2916_s11, %s1427_s18 }
 0x2bd   : > { %1572 = sst [smem:[#allocation13 + $0x2]] (%p2915_p9), %s1935_s13 }
 0x2be   : > { %1573 = sst [smem:[#allocation13 + $0x3]] (%p2915_p9), %s1936_s30 }
 0x2bf   : > { %1574 = sst [smem:[#allocation13 + $0x4]] (%p2915_p9), %s1936_s30 }
 0x2c0   : > { %1575 = sst [smem:[#allocation13 + $0x5]] (%p2915_p9), %s1937_s8 }
 0x2c1   : > { %1576 = dma.general (%p2915_p9), %s1194_s16, 6144, %s1176_s24, %s1147_s21, %s1938_s3, [#allocation13], %s1939_s19, 0  }
 0x2c2 PF: > { %s2917_s27 = sld [smem:[#allocation21_spill]]  ;;  %s2918_s7 = sld [smem:[#allocation18_spill]] }
 0x2c3   : > { %s2919_s9 = sld [smem:[#allocation23_spill]] }
 0x2c8   : > { %p1602_p3 = scmp.ge.s32.totalorder %s2917_s27, 2  ;;  %s1221_s23 = sand.u32 1, %s2918_s7  }
 0x2c9   : > { %p2920_p4 = scmp.ne.s32.totalorder %s2919_s9, 0  ;;  %s1222_s14 = scalar_lea.sflag [#allocation5], %s1221_s23 }
 0x2cb   : > { %p1591_p13 = pnand %p1602_p3, %p2920_p4 }
 0x2cd   : > { %1873 = dma.done.wait (!%p1591_p13), %s1222_s14, 128  }
 0x2ce   : > { %1875 = vsyncadd (!%p1591_p13), %s1222_s14, 4294967168  ;;  %s2921_s18 = sld [smem:[#allocation19_spill]]  ;;  %s2922_s4 = sld [smem:[#allocation24_spill]] }
 0x2d4   : > { %s1230_s6 = sand.u32 1, %s2921_s18   ;;  %p2923_p6 = scmp.ne.s32.totalorder %s2922_s4, 0 }
 0x2d5   : > { %s1231_s20 = scalar_lea.sflag [#allocation11], %s1230_s6 }
 0x2d6   : > { %p1594_p1 = pnand %p1602_p3, %p2923_p6 }
 0x2d8   : > { %1877 = dma.done.wait (!%p1594_p1), %s1231_s20, 6144  }
 0x2d9   : > { %1879 = vsyncadd (!%p1594_p1), %s1231_s20, 4294961152  ;;  %s28_s11 = sadd.s32 1, %s2917_s27   ;;  %s2924_s30 = sld [smem:[#allocation20_spill]] }
 0x2da   : > { %p25_p11 = scmp.ge.s32.totalorder %s28_s11, 8   ;;  %s2925_s9 = sld [smem:[#allocation25_spill]] }
 0x2db   : > { %s2926_s21 = sld [smem:[#allocation26_spill]]  ;;  %s2927_s24 = smov %s1886_s25 }
 0x2dc   : > { %s2928_s25 = smov %s1890_s26  ;;  %s2929_s26 = smov %s2165_s22 }
 0x2dd   : > { %s2930_s27 = smov %s1898_s28  ;;  %s2931_s28 = smov %s1902_s29 }
 0x2de   : > { %s2932_s29 = smov %s2170_s17  ;;  %s2933_s8 = smov %s1918_s10 }
 0x2df   :  { %27 = sbr.rel (!%p25_p11) target bundleno = 17 (0x11), region = 132 }
 0x2e1   : > { %s2934_s10 = smov %s2926_s21 }
 0x2e6   :  { %1236 = vsyncpa [#allocation4], 1 }
 0x2e7   :  { %1238 = vsyncpa [#allocation4 + $0x1], 1 }
 0x2e8   :  { %1239 = vsyncpa [#allocation7], 1 }
 0x2e9   :  { %1240 = vsyncpa [#allocation5], 1 }
 0x2ea   :  { %1242 = vsyncpa [#allocation5 + $0x1], 1 }
 0x2eb   :  { %1243 = vsyncpa [#allocation11], 1 }
 0x2ec   :  { %1245 = vsyncpa [#allocation11 + $0x1], 1 }

</bundles_post_ra>
